<compile_context>
chip_gen: v7x
topology: tpu7x:2x2x1
jax: 0.10.0
libtpu: 0.0.40
codegen_flags: <defaults>
</compile_context>

<pallas_src>
import jax
import jax.numpy as jnp
from jax.experimental import pallas as pl
from jax.experimental.pallas import tpu as pltpu


def loss_estimator_kernel(x1_ref, x2_ref, x3_ref, x4_ref,
                          w1_ref, b1_ref, w2_ref, b2_ref,
                          w3_ref, b3_ref, w4_ref, b4_ref,
                          wf_ref, bf_ref, o_ref):
    """All refs live in VMEM. Shapes:
       xk_ref: (B, Hk*Wk, Ck)  channels-last (C on the lane axis)
       wk_ref: (Ck, D)         pre-scaled by 1/(Hk*Wk) on the host
       bk_ref: (1, D)
       wf_ref: (1, 4*D)        final linear weight as a lane-dense row
       bf_ref: (1, 1)          o_ref: (B, 1)
    """
    def branch(x_ref, w_ref, b_ref):
        # Sum-pool over the spatial (sublane) axis; the 1/(H*W) scale is
        # already folded into w_ref, so this is exactly the GAP of the module.
        pooled = jnp.sum(x_ref[...], axis=1)                        # (B, C)
        h = jnp.dot(pooled, w_ref[...],
                    preferred_element_type=jnp.float32) + b_ref[...]
        return jnp.maximum(h, 0.0)                                   # ReLU

    h1 = branch(x1_ref, w1_ref, b1_ref)
    h2 = branch(x2_ref, w2_ref, b2_ref)
    h3 = branch(x3_ref, w3_ref, b3_ref)
    h4 = branch(x4_ref, w4_ref, b4_ref)

    # cat((h1..h4), 1) @ wf  -- with N=1 the MXU would waste 255/256 output
    # columns, so do it as one VPU multiply + lane reduce instead.
    cat = jnp.concatenate([h1, h2, h3, h4], axis=1)                  # (B, 4*D)
    wf = wf_ref[...]                                                 # (1, 4*D)
    out = jnp.sum(cat * wf, axis=-1, keepdims=True) + bf_ref[...]    # (B, 1)
    o_ref[...] = out


def loss_estimator_forward(features, params):
    """features: list of 4 NCHW float32 arrays; params: dict of weights/biases
    (weights stored as (in, out), i.e. transposed vs. torch.nn.Linear)."""
    B = features[0].shape[0]
    D = params["b1"].shape[-1]

    xs = []
    inv_hw = []
    for f in features:
        b, c, h, w = f.shape
        # NCHW -> (B, H*W, C): channels-last so C sits on the 128-lane axis.
        xs.append(jnp.transpose(f, (0, 2, 3, 1)).reshape(b, h * w, c))
        inv_hw.append(1.0 / float(h * w))

    args = [xs[0], xs[1], xs[2], xs[3],
            params["w1"] * inv_hw[0], params["b1"],
            params["w2"] * inv_hw[1], params["b2"],
            params["w3"] * inv_hw[2], params["b3"],
            params["w4"] * inv_hw[3], params["b4"],
            params["wf"].reshape(1, -1),   # (4*D, 1) -> (1, 4*D) lane-dense row
            params["bf"]]

    # Advisory cost estimate so XLA can schedule/overlap this tiny kernel.
    flops = 0
    bytes_accessed = 0
    for f in features:
        b, c, h, w = f.shape
        flops += 2 * b * h * w * c        # sum-pool adds
        flops += 2 * b * c * D            # branch FC
        bytes_accessed += f.size * f.dtype.itemsize
    flops += 2 * B * 4 * D                # tail reduce
    bytes_accessed += sum(int(p.size) * 4 for p in params.values()) + B * 4
    cost = pl.CostEstimate(flops=flops, transcendentals=0,
                           bytes_accessed=bytes_accessed)

    vmem_spec = pl.BlockSpec(memory_space=pltpu.MemorySpace.VMEM)
    return pl.pallas_call(
        loss_estimator_kernel,
        out_shape=jax.ShapeDtypeStruct((B, 1), jnp.float32),
        in_specs=[vmem_spec] * len(args),
        out_specs=vmem_spec,
        cost_estimate=cost,
    )(*args)


def reference_forward(features, params):
    """Pure-JAX reference mirroring the PyTorch module exactly."""
    hs = []
    for i, f in enumerate(features):
        pooled = jnp.mean(f.astype(jnp.float32), axis=(2, 3))        # GAP -> (B, C)
        h = pooled @ params[f"w{i+1}"] + params[f"b{i+1}"]           # Linear
        hs.append(jnp.maximum(h, 0.0))                               # ReLU
    cat = jnp.concatenate(hs, axis=1)
    return cat @ params["wf"] + params["bf"]


if __name__ == "__main__":
    # Small shapes consistent with the module's forward:
    # features[i]: (B, num_channels[i], feature_sizes[i], feature_sizes[i])
    B = 8
    feature_sizes = [16, 8, 4, 4]
    num_channels = [32, 64, 128, 128]
    interm_dim = 32

    key = jax.random.PRNGKey(0)
    keys = jax.random.split(key, 16)

    features = [
        jax.random.normal(keys[i],
                          (B, num_channels[i], feature_sizes[i], feature_sizes[i]),
                          dtype=jnp.float32)
        for i in range(4)
    ]

    # Deterministic parameter init (weights stored as (in, out)).
    params = {}
    for i in range(4):
        c = num_channels[i]
        scale = 1.0 / jnp.sqrt(jnp.float32(c))
        params[f"w{i+1}"] = scale * jax.random.normal(
            keys[4 + i], (c, interm_dim), dtype=jnp.float32)
        params[f"b{i+1}"] = scale * jax.random.normal(
            keys[8 + i], (1, interm_dim), dtype=jnp.float32)
    scale_f = 1.0 / jnp.sqrt(jnp.float32(4 * interm_dim))
    params["wf"] = scale_f * jax.random.normal(
        keys[12], (4 * interm_dim, 1), dtype=jnp.float32)
    params["bf"] = scale_f * jax.random.normal(keys[13], (1, 1), dtype=jnp.float32)

    out = loss_estimator_forward(features, params)
    out = jax.block_until_ready(out)

    ref = reference_forward(features, params)
    assert out.shape == (B, 1)
    assert jnp.allclose(out, ref, atol=1e-4, rtol=1e-4), "mismatch vs pure-JAX reference"

    print("KERNEL_OK")
</pallas_src>

<mosaic_0001>
module attributes {stable_mosaic.version = 11 : i64} {
  func.func @loss_estimator_kernel(%arg0: memref<8x256x32xf32, #tpu.memory_space<vmem>>, %arg1: memref<8x64x64xf32, #tpu.memory_space<vmem>>, %arg2: memref<8x16x128xf32, #tpu.memory_space<vmem>>, %arg3: memref<8x16x128xf32, #tpu.memory_space<vmem>>, %arg4: memref<32x32xf32, #tpu.memory_space<vmem>>, %arg5: memref<1x32xf32, #tpu.memory_space<vmem>>, %arg6: memref<64x32xf32, #tpu.memory_space<vmem>>, %arg7: memref<1x32xf32, #tpu.memory_space<vmem>>, %arg8: memref<128x32xf32, #tpu.memory_space<vmem>>, %arg9: memref<1x32xf32, #tpu.memory_space<vmem>>, %arg10: memref<128x32xf32, #tpu.memory_space<vmem>>, %arg11: memref<1x32xf32, #tpu.memory_space<vmem>>, %arg12: memref<1x128xf32, #tpu.memory_space<vmem>>, %arg13: memref<1x1xf32, #tpu.memory_space<vmem>>, %arg14: memref<8x1xf32, #tpu.memory_space<vmem>>) attributes {dimension_semantics = [], scalar_prefetch = 0 : i64, scratch_operands = 0 : i64, tpu.core_type = #tpu.core_type<tc>} {
    %c0 = arith.constant 0 : index
    %c0_0 = arith.constant 0 : index
    %c0_1 = arith.constant 0 : index
    %0 = vector.load %arg0[%c0, %c0_0, %c0_1] : memref<8x256x32xf32, #tpu.memory_space<vmem>>, vector<8x256x32xf32>
    %cst = arith.constant dense<0.000000e+00> : vector<8x32xf32>
    %1 = vector.multi_reduction <add>, %0, %cst [1] : vector<8x256x32xf32> to vector<8x32xf32>
    %c0_2 = arith.constant 0 : index
    %c0_3 = arith.constant 0 : index
    %2 = vector.load %arg4[%c0_2, %c0_3] : memref<32x32xf32, #tpu.memory_space<vmem>>, vector<32x32xf32>
    %cst_4 = arith.constant dense<0.000000e+00> : vector<8x32xf32>
    %3 = tpu.matmul %1, %2, %cst_4 {dimension_numbers = #tpu.dot_dimension_numbers<[1], [0], [0], [1], [0, 0, 1, 1], [], []>} : vector<8x32xf32>, vector<32x32xf32>, vector<8x32xf32> -> vector<8x32xf32>
    %c0_5 = arith.constant 0 : index
    %c0_6 = arith.constant 0 : index
    %4 = vector.load %arg5[%c0_5, %c0_6] : memref<1x32xf32, #tpu.memory_space<vmem>>, vector<1x32xf32>
    %5 = vector.broadcast %4 : vector<1x32xf32> to vector<8x32xf32>
    %6 = arith.addf %3, %5 : vector<8x32xf32>
    %cst_7 = arith.constant 0.000000e+00 : f32
    %7 = vector.broadcast %cst_7 : f32 to vector<8x32xf32>
    %8 = arith.maximumf %6, %7 : vector<8x32xf32>
    %c0_8 = arith.constant 0 : index
    %c0_9 = arith.constant 0 : index
    %c0_10 = arith.constant 0 : index
    %9 = vector.load %arg1[%c0_8, %c0_9, %c0_10] : memref<8x64x64xf32, #tpu.memory_space<vmem>>, vector<8x64x64xf32>
    %cst_11 = arith.constant dense<0.000000e+00> : vector<8x64xf32>
    %10 = vector.multi_reduction <add>, %9, %cst_11 [1] : vector<8x64x64xf32> to vector<8x64xf32>
    %c0_12 = arith.constant 0 : index
    %c0_13 = arith.constant 0 : index
    %11 = vector.load %arg6[%c0_12, %c0_13] : memref<64x32xf32, #tpu.memory_space<vmem>>, vector<64x32xf32>
    %cst_14 = arith.constant dense<0.000000e+00> : vector<8x32xf32>
    %12 = tpu.matmul %10, %11, %cst_14 {dimension_numbers = #tpu.dot_dimension_numbers<[1], [0], [0], [1], [0, 0, 1, 1], [], []>} : vector<8x64xf32>, vector<64x32xf32>, vector<8x32xf32> -> vector<8x32xf32>
    %c0_15 = arith.constant 0 : index
    %c0_16 = arith.constant 0 : index
    %13 = vector.load %arg7[%c0_15, %c0_16] : memref<1x32xf32, #tpu.memory_space<vmem>>, vector<1x32xf32>
    %14 = vector.broadcast %13 : vector<1x32xf32> to vector<8x32xf32>
    %15 = arith.addf %12, %14 : vector<8x32xf32>
    %cst_17 = arith.constant 0.000000e+00 : f32
    %16 = vector.broadcast %cst_17 : f32 to vector<8x32xf32>
    %17 = arith.maximumf %15, %16 : vector<8x32xf32>
    %c0_18 = arith.constant 0 : index
    %c0_19 = arith.constant 0 : index
    %c0_20 = arith.constant 0 : index
    %18 = vector.load %arg2[%c0_18, %c0_19, %c0_20] : memref<8x16x128xf32, #tpu.memory_space<vmem>>, vector<8x16x128xf32>
    %cst_21 = arith.constant dense<0.000000e+00> : vector<8x128xf32>
    %19 = vector.multi_reduction <add>, %18, %cst_21 [1] : vector<8x16x128xf32> to vector<8x128xf32>
    %c0_22 = arith.constant 0 : index
    %c0_23 = arith.constant 0 : index
    %20 = vector.load %arg8[%c0_22, %c0_23] : memref<128x32xf32, #tpu.memory_space<vmem>>, vector<128x32xf32>
    %cst_24 = arith.constant dense<0.000000e+00> : vector<8x32xf32>
    %21 = tpu.matmul %19, %20, %cst_24 {dimension_numbers = #tpu.dot_dimension_numbers<[1], [0], [0], [1], [0, 0, 1, 1], [], []>} : vector<8x128xf32>, vector<128x32xf32>, vector<8x32xf32> -> vector<8x32xf32>
    %c0_25 = arith.constant 0 : index
    %c0_26 = arith.constant 0 : index
    %22 = vector.load %arg9[%c0_25, %c0_26] : memref<1x32xf32, #tpu.memory_space<vmem>>, vector<1x32xf32>
    %23 = vector.broadcast %22 : vector<1x32xf32> to vector<8x32xf32>
    %24 = arith.addf %21, %23 : vector<8x32xf32>
    %cst_27 = arith.constant 0.000000e+00 : f32
    %25 = vector.broadcast %cst_27 : f32 to vector<8x32xf32>
    %26 = arith.maximumf %24, %25 : vector<8x32xf32>
    %c0_28 = arith.constant 0 : index
    %c0_29 = arith.constant 0 : index
    %c0_30 = arith.constant 0 : index
    %27 = vector.load %arg3[%c0_28, %c0_29, %c0_30] : memref<8x16x128xf32, #tpu.memory_space<vmem>>, vector<8x16x128xf32>
    %cst_31 = arith.constant dense<0.000000e+00> : vector<8x128xf32>
    %28 = vector.multi_reduction <add>, %27, %cst_31 [1] : vector<8x16x128xf32> to vector<8x128xf32>
    %c0_32 = arith.constant 0 : index
    %c0_33 = arith.constant 0 : index
    %29 = vector.load %arg10[%c0_32, %c0_33] : memref<128x32xf32, #tpu.memory_space<vmem>>, vector<128x32xf32>
    %cst_34 = arith.constant dense<0.000000e+00> : vector<8x32xf32>
    %30 = tpu.matmul %28, %29, %cst_34 {dimension_numbers = #tpu.dot_dimension_numbers<[1], [0], [0], [1], [0, 0, 1, 1], [], []>} : vector<8x128xf32>, vector<128x32xf32>, vector<8x32xf32> -> vector<8x32xf32>
    %c0_35 = arith.constant 0 : index
    %c0_36 = arith.constant 0 : index
    %31 = vector.load %arg11[%c0_35, %c0_36] : memref<1x32xf32, #tpu.memory_space<vmem>>, vector<1x32xf32>
    %32 = vector.broadcast %31 : vector<1x32xf32> to vector<8x32xf32>
    %33 = arith.addf %30, %32 : vector<8x32xf32>
    %cst_37 = arith.constant 0.000000e+00 : f32
    %34 = vector.broadcast %cst_37 : f32 to vector<8x32xf32>
    %35 = arith.maximumf %33, %34 : vector<8x32xf32>
    %36 = tpu.concatenate %8, %17, %26, %35 in 1 : vector<8x32xf32>, vector<8x32xf32>, vector<8x32xf32>, vector<8x32xf32> -> vector<8x128xf32>
    %c0_38 = arith.constant 0 : index
    %c0_39 = arith.constant 0 : index
    %37 = vector.load %arg12[%c0_38, %c0_39] : memref<1x128xf32, #tpu.memory_space<vmem>>, vector<1x128xf32>
    %38 = vector.broadcast %37 : vector<1x128xf32> to vector<8x128xf32>
    %39 = arith.mulf %36, %38 : vector<8x128xf32>
    %cst_40 = arith.constant dense<0.000000e+00> : vector<8xf32>
    %40 = vector.multi_reduction <add>, %39, %cst_40 [1] : vector<8x128xf32> to vector<8xf32>
    %41 = vector.shape_cast %40 : vector<8xf32> to vector<8x1xf32>
    %c0_41 = arith.constant 0 : index
    %c0_42 = arith.constant 0 : index
    %42 = vector.load %arg13[%c0_41, %c0_42] : memref<1x1xf32, #tpu.memory_space<vmem>>, vector<1x1xf32>
    %43 = vector.broadcast %42 : vector<1x1xf32> to vector<8x1xf32>
    %44 = arith.addf %41, %43 : vector<8x1xf32>
    %c0_43 = arith.constant 0 : index
    %c0_44 = arith.constant 0 : index
    %45 = vector.load %arg14[%c0_43, %c0_44] : memref<8x1xf32, #tpu.memory_space<vmem>>, vector<8x1xf32>
    tpu.vector_store %arg14[%c0_43, %c0_44], %44 {strides = array<i32>} : memref<8x1xf32, #tpu.memory_space<vmem>>, vector<8x1xf32>,
    return
  }
}

</mosaic_0001>

<bundles_post_ra>
// kernel: tpu_custom_call.1
= control target key start
LH: loop header
LB: loop body
LE: loop exit
PB: predicated region body
PF: predicated region fallthrough
CT: control target
= control target key end

     0   :  { %v1932_v0 = vmov 0.0|0.0   ;;  %vm1933_vm0 = vmmov 0   ;;  %v1934_v4 = vmov 0.0   ;;  %vm1028_vm1 = vcmask 523264   ;;  %s3753_s6 = inlined_call_operand.vmem [shape: f32[64,32], index: 6, kind: input, shape index: {}]   ;;  %s3754_s1 = inlined_call_operand.vmem [shape: f32[8,64,64], index: 1, kind: input, shape index: {}]   ;;  %s3755_s4 = inlined_call_operand.vmem [shape: f32[32,32], index: 4, kind: input, shape index: {}]   ;;  %s3756_s0 = inlined_call_operand.vmem [shape: f32[8,256,32], index: 0, kind: input, shape index: {}]   ;;  %s3757_s10 = inlined_call_operand.vmem [shape: f32[128,32], index: 10, kind: input, shape index: {}]   ;;  %s3758_s3 = inlined_call_operand.vmem [shape: f32[8,16,128], index: 3, kind: input, shape index: {}]   ;;  %s3759_s2 = inlined_call_operand.vmem [shape: f32[8,16,128], index: 2, kind: input, shape index: {}]   ;;  %s3760_s8 = inlined_call_operand.vmem [shape: f32[128,32], index: 8, kind: input, shape index: {}]   ;;  %s3761_s7 = inlined_call_operand.vmem [shape: f32[1,32], index: 7, kind: input, shape index: {}]   ;;  %s3762_s11 = inlined_call_operand.vmem [shape: f32[1,32], index: 11, kind: input, shape index: {}]   ;;  %s3763_s9 = inlined_call_operand.vmem [shape: f32[1,32], index: 9, kind: input, shape index: {}]   ;;  %s3764_s13 = inlined_call_operand.<no memory space> [shape: f32[1,1], index: 13, kind: input, shape index: {}]   ;;  %s3765_s5 = inlined_call_operand.vmem [shape: f32[1,32], index: 5, kind: input, shape index: {}]   ;;  %s3766_s12 = inlined_call_operand.vmem [shape: f32[1,128], index: 12, kind: input, shape index: {}]   ;;  %s3767_s14 = inlined_call_operand.vmem [shape: f32[8,1], index: 14, kind: output, shape index: {}]  }
   0x1   :  { %1866 = vmatprep.subr.bf16.mxu1 %v1932_v0  ;;  %v1197_v1 = vld [vmem:[%s3753_s6] sm:$0xff]  ;;  %v1198_v2 = vld [vmem:[%s3753_s6 + $0x8] sm:$0xff]  ;;  %v1199_v3 = vld [vmem:[%s3753_s6 + $0x10] sm:$0xff]  ;;  %1787 = vmatprep.mubr.msk.f32.mxu1 %vm1933_vm0, %v1934_v4  ;;  %vm305_vm2 = vcmask 261120   ;;  %vm877_vm3 = vcmask 1041409   ;;  %vm879_vm4 = vcmask 1042434  }
   0x2   :  { %v1867_v5 = vpack.c.bf16 %v1198_v2, %v1197_v1  ;;  %v1200_v6 = vld [vmem:[%s3753_s6 + $0x18] sm:$0xff]  ;;  %1860 = vmatprep.subr.bf16.mxu0 %v1932_v0  ;;  %1768 = vmatprep.mubr.msk.f32.mxu0 %vm1933_vm0, %v1934_v4  ;;  %v964_v7 = vld [vmem:[%s3754_s1] sm:$0xff]  ;;  %v965_v9 = vld [vmem:[%s3754_s1 + $0x8] sm:$0xff]  ;;  %vm881_vm5 = vcmask 1043459   ;;  %vm883_vm6 = vcmask 1044484   ;;  %vm885_vm7 = vcmask 1045509  }
   0x3   :  { %v1870_v8 = vpack.c.bf16 %v1200_v6, %v1199_v3  ;;  %v966_v10 = vld [vmem:[%s3754_s1 + $0x10] sm:$0xff]  ;;  %v967_v11 = vld [vmem:[%s3754_s1 + $0x18] sm:$0xff]  ;;  %v1029_v12 = vsel %vm1028_vm1, %v964_v7, 0.0  ;;  %v1201_v13 = vld [vmem:[%s3753_s6 + $0x20] sm:$0xff]  ;;  %v1030_v15 = vsel %vm1028_vm1, %v965_v9, 0.0  ;;  %vm887_vm8 = vcmask 1046534  }
   0x4   :  { %1868 = vmatpush3.bf16.msra.mxu1 %v1867_v5  ;;  %v1202_v14 = vld [vmem:[%s3753_s6 + $0x28] sm:$0xff]  ;;  %v1032_v16 = vsel %vm1028_vm1, %v966_v10, 0.0  ;;  %v968_v17 = vld [vmem:[%s3754_s1 + $0x20] sm:$0xff]  ;;  %v1031_v20 = vadd.f32 %v1030_v15, %v1029_v12  ;;  %v1203_v21 = vld [vmem:[%s3753_s6 + $0x30] sm:$0xff]  ;;  %v1034_v25 = vsel %vm1028_vm1, %v967_v11, 0.0  ;;  %vm889_vm9 = vcmask 1047559  }
   0x5   :  { %1869 = vmatprep.subr.bf16.mxu1 %v1932_v0  ;;  %v972_v18 = vld [vmem:[%s3754_s1 + $0x40] sm:$0xff]  ;;  %v973_v19 = vld [vmem:[%s3754_s1 + $0x48] sm:$0xff]  ;;  %v1204_v22 = vld [vmem:[%s3753_s6 + $0x38] sm:$0xff]  ;;  %v1873_v28 = vpack.c.bf16 %v1202_v14, %v1201_v13  ;;  %v1036_v38 = vsel %vm1028_vm1, %v968_v17, 0.0  ;;  %vm1678_vm10 = vcmask 785408   ;;  %vm1698_vm11 = vcmask 7168  }
   0x6   :  { %v974_v23 = vld [vmem:[%s3754_s1 + $0x50] sm:$0xff]  ;;  %v975_v24 = vld [vmem:[%s3754_s1 + $0x58] sm:$0xff]  ;;  %v1050_v26 = vsel %vm1028_vm1, %v972_v18, 0.0  ;;  %v1051_v27 = vsel %vm1028_vm1, %v973_v19, 0.0  ;;  %v969_v29 = vld [vmem:[%s3754_s1 + $0x28] sm:$0xff]  ;;  %v1033_v32 = vadd.f32 %v1032_v16, %v1031_v20  ;;  %v1876_v52 = vpack.c.bf16 %v1204_v22, %v1203_v21 }
   0x7   :  { %v970_v30 = vld [vmem:[%s3754_s1 + $0x30] sm:$0xff]  ;;  %v976_v31 = vld [vmem:[%s3754_s1 + $0x60] sm:$0xff]  ;;  %v1052_v33 = vadd.f32 %v1051_v27, %v1050_v26  ;;  %v1053_v34 = vsel %vm1028_vm1, %v974_v23, 0.0  ;;  %v981_v36 = vld [vmem:[%s3754_s1 + $0x88] sm:$0xff]  ;;  %v1055_v39 = vsel %vm1028_vm1, %v975_v24, 0.0  ;;  %v1038_v48 = vsel %vm1028_vm1, %v969_v29, 0.0 }
   0x8   :  { %1871 = vmatpush3.bf16.msra.mxu1 %v1870_v8  ;;  %v980_v35 = vld [vmem:[%s3754_s1 + $0x80] sm:$0xff]  ;;  %v982_v37 = vld [vmem:[%s3754_s1 + $0x90] sm:$0xff]  ;;  %v971_v40 = vld [vmem:[%s3754_s1 + $0x38] sm:$0xff]  ;;  %v1035_v43 = vadd.f32 %v1034_v25, %v1033_v32  ;;  %v1057_v49 = vsel %vm1028_vm1, %v976_v31, 0.0  ;;  %v1072_v50 = vsel %vm1028_vm1, %v981_v36, 0.0  ;;  %v1040_v60 = vsel %vm1028_vm1, %v970_v30, 0.0 }
   0x9   :  { %1872 = vmatprep.subr.bf16.mxu1 %v1932_v0  ;;  %v977_v41 = vld [vmem:[%s3754_s1 + $0x68] sm:$0xff]  ;;  %v983_v42 = vld [vmem:[%s3754_s1 + $0x98] sm:$0xff]  ;;  %v1054_v44 = vadd.f32 %v1053_v34, %v1052_v33  ;;  %v1071_v45 = vsel %vm1028_vm1, %v980_v35, 0.0  ;;  %v978_v46 = vld [vmem:[%s3754_s1 + $0x70] sm:$0xff]  ;;  %v1074_v51 = vsel %vm1028_vm1, %v982_v37, 0.0  ;;  %v1042_v61 = vsel %vm1028_vm1, %v971_v40, 0.0 }
   0xa   :  { %v988_v47 = vld [vmem:[%s3754_s1 + $0xc0] sm:$0xff]  ;;  %v989_v54 = vld [vmem:[%s3754_s1 + $0xc8] sm:$0xff]  ;;  %v990_v55 = vld [vmem:[%s3754_s1 + $0xd0] sm:$0xff]  ;;  %v1037_v56 = vadd.f32 %v1036_v38, %v1035_v43  ;;  %v1073_v58 = vadd.f32 %v1072_v50, %v1071_v45  ;;  %v1059_v62 = vsel %vm1028_vm1, %v977_v41, 0.0  ;;  %v1076_v63 = vsel %vm1028_vm1, %v983_v42, 0.0 }
   0xb   :  { %v984_v53 = vld [vmem:[%s3754_s1 + $0xa0] sm:$0xff]  ;;  %v1056_v57 = vadd.f32 %v1055_v39, %v1054_v44  ;;  %v979_v59 = vld [vmem:[%s3754_s1 + $0x78] sm:$0xff]  ;;  %v985_v1 = vld [vmem:[%s3754_s1 + $0xa8] sm:$0xff]  ;;  %v1092_v8 = vsel %vm1028_vm1, %v988_v47, 0.0  ;;  %v1061_v10 = vsel %vm1028_vm1, %v978_v46, 0.0  ;;  %v1093_v12 = vsel %vm1028_vm1, %v989_v54, 0.0 }
   0xc   :  { %1874 = vmatpush3.bf16.msra.mxu1 %v1873_v28  ;;  %v986_v2 = vld [vmem:[%s3754_s1 + $0xb0] sm:$0xff]  ;;  %v991_v3 = vld [vmem:[%s3754_s1 + $0xd8] sm:$0xff]  ;;  %v1039_v5 = vadd.f32 %v1038_v48, %v1037_v56  ;;  %v1075_v7 = vadd.f32 %v1074_v51, %v1073_v58  ;;  %v1078_v11 = vsel %vm1028_vm1, %v984_v53, 0.0  ;;  %v1095_v13 = vsel %vm1028_vm1, %v990_v55, 0.0  ;;  %v992_v14 = vld [vmem:[%s3754_s1 + $0xe0] sm:$0xff] }
   0xd   :  { %1875 = vmatprep.subr.bf16.mxu1 %v1932_v0  ;;  %v1058_v6 = vadd.f32 %v1057_v49, %v1056_v57  ;;  %v987_v9 = vld [vmem:[%s3754_s1 + $0xb8] sm:$0xff]  ;;  %v996_v15 = vld [vmem:[%s3754_s1 + $0x100] sm:$0xff]  ;;  %v997_v16 = vld [vmem:[%s3754_s1 + $0x108] sm:$0xff]  ;;  %v1094_v20 = vadd.f32 %v1093_v12, %v1092_v8  ;;  %v1063_v21 = vsel %vm1028_vm1, %v979_v59, 0.0  ;;  %v1080_v22 = vsel %vm1028_vm1, %v985_v1, 0.0 }
   0xe   :  { %v1041_v17 = vadd.f32 %v1040_v60, %v1039_v5  ;;  %v1077_v19 = vadd.f32 %v1076_v63, %v1075_v7  ;;  %v1082_v23 = vsel %vm1028_vm1, %v986_v2, 0.0  ;;  %v1097_v24 = vsel %vm1028_vm1, %v991_v3, 0.0  ;;  %v993_v25 = vld [vmem:[%s3754_s1 + $0xe8] sm:$0xff]  ;;  %v998_v26 = vld [vmem:[%s3754_s1 + $0x110] sm:$0xff]  ;;  %v999_v27 = vld [vmem:[%s3754_s1 + $0x118] sm:$0xff] }
   0xf   :  { %v1060_v18 = vadd.f32 %v1059_v62, %v1058_v6  ;;  %v1096_v31 = vadd.f32 %v1095_v13, %v1094_v20  ;;  %v1084_v32 = vsel %vm1028_vm1, %v987_v9, 0.0  ;;  %v1099_v33 = vsel %vm1028_vm1, %v992_v14, 0.0  ;;  %v994_v36 = vld [vmem:[%s3754_s1 + $0xf0] sm:$0xff]  ;;  %v995_v37 = vld [vmem:[%s3754_s1 + $0xf8] sm:$0xff]  ;;  %v1000_v42 = vld [vmem:[%s3754_s1 + $0x120] sm:$0xff] }
  0x10   :  { %1877 = vmatpush3.bf16.msra.mxu1 %v1876_v52  ;;  %v1043_v28 = vadd.f32 %v1042_v61, %v1041_v17  ;;  %v1079_v30 = vadd.f32 %v1078_v11, %v1077_v19  ;;  %v1113_v34 = vsel %vm1028_vm1, %v996_v15, 0.0  ;;  %v1114_v35 = vsel %vm1028_vm1, %v997_v16, 0.0  ;;  %v1001_v47 = vld [vmem:[%s3754_s1 + $0x128] sm:$0xff]  ;;  %v1004_v48 = vld [vmem:[%s3754_s1 + $0x140] sm:$0xff]  ;;  %v1006_v54 = vld [vmem:[%s3754_s1 + $0x150] sm:$0xff] }
  0x11   :  { %1902 = vmatprep.subr.bf16.mxu1 %v1932_v0  ;;  %v1062_v29 = vadd.f32 %v1061_v10, %v1060_v18  ;;  %v1098_v41 = vadd.f32 %v1097_v24, %v1096_v31  ;;  %v1101_v43 = vsel %vm1028_vm1, %v993_v25, 0.0  ;;  %v1115_v44 = vadd.f32 %v1114_v35, %v1113_v34  ;;  %v1005_v49 = vld [vmem:[%s3754_s1 + $0x148] sm:$0xff]  ;;  %v1002_v62 = vld [vmem:[%s3754_s1 + $0x130] sm:$0xff]  ;;  %v1007_v63 = vld [vmem:[%s3754_s1 + $0x158] sm:$0xff] }
  0x12   :  { %v1044_v38 = vrot.slane %v1043_v28, 4  ;;  %v1081_v40 = vadd.f32 %v1080_v22, %v1079_v30  ;;  %v1116_v45 = vsel %vm1028_vm1, %v998_v26, 0.0  ;;  %v1118_v46 = vsel %vm1028_vm1, %v999_v27, 0.0  ;;  %v1003_v10 = vld [vmem:[%s3754_s1 + $0x138] sm:$0xff]  ;;  %v1008_v11 = vld [vmem:[%s3754_s1 + $0x160] sm:$0xff]  ;;  %v1009_v20 = vld [vmem:[%s3754_s1 + $0x168] sm:$0xff] }
  0x13   :  { %v1064_v39 = vadd.f32 %v1063_v21, %v1062_v29  ;;  %v1100_v53 = vadd.f32 %v1099_v33, %v1098_v41  ;;  %v1103_v55 = vsel %vm1028_vm1, %v994_v36, 0.0  ;;  %v1105_v56 = vsel %vm1028_vm1, %v995_v37, 0.0  ;;  %v1012_v15 = vld [vmem:[%s3754_s1 + $0x180] sm:$0xff]  ;;  %v1013_v21 = vld [vmem:[%s3754_s1 + $0x188] sm:$0xff]  ;;  %v1014_v24 = vld [vmem:[%s3754_s1 + $0x190] sm:$0xff] }
  0x14   :  { %v1045_v50 = vadd.f32 %v1044_v38, %v1043_v28  ;;  %v1083_v52 = vadd.f32 %v1082_v23, %v1081_v40  ;;  %v1117_v57 = vadd.f32 %v1116_v45, %v1115_v44  ;;  %v1120_v61 = vsel %vm1028_vm1, %v1000_v42, 0.0  ;;  %v1010_v29 = vld [vmem:[%s3754_s1 + $0x170] sm:$0xff]  ;;  %v1015_v30 = vld [vmem:[%s3754_s1 + $0x198] sm:$0xff]  ;;  %v1016_v40 = vld [vmem:[%s3754_s1 + $0x1a0] sm:$0xff] }
  0x15   :  { %v1065_v51 = vrot.slane %v1064_v39, 4  ;;  %v1102_v60 = vadd.f32 %v1101_v43, %v1100_v53  ;;  %v1122_v2 = vsel %vm1028_vm1, %v1001_v47, 0.0  ;;  %v1134_v3 = vsel %vm1028_vm1, %v1004_v48, 0.0  ;;  %v1020_v45 = vld [vmem:[%s3754_s1 + $0x1c0] sm:$0xff] }
  0x16   :  { %v1085_v59 = vadd.f32 %v1084_v32, %v1083_v52  ;;  %v1119_v1 = vadd.f32 %v1118_v46, %v1117_v57  ;;  %v1135_v5 = vsel %vm1028_vm1, %v1005_v49, 0.0  ;;  %v1046_v6 = vrot.slane %v1045_v50, 2  ;;  %v1017_v49 = vld [vmem:[%s3754_s1 + $0x1a8] sm:$0xff] }
  0x17   :  { %v1066_v58 = vadd.f32 %v1065_v51, %v1064_v39  ;;  %v1104_v8 = vadd.f32 %v1103_v55, %v1102_v60  ;;  %v1137_v9 = vsel %vm1028_vm1, %v1006_v54, 0.0  ;;  %v1136_v14 = vadd.f32 %v1135_v5, %v1134_v3  ;;  %v1011_v39 = vld [vmem:[%s3754_s1 + $0x178] sm:$0xff]  ;;  %v1022_v51 = vld [vmem:[%s3754_s1 + $0x1d0] sm:$0xff] }
  0x18   :  { %v1086_v7 = vrot.slane %v1085_v59, 4  ;;  %v1121_v13 = vadd.f32 %v1120_v61, %v1119_v1  ;;  %v1124_v18 = vsel %vm1028_vm1, %v1002_v62, 0.0  ;;  %v1139_v19 = vsel %vm1028_vm1, %v1007_v63, 0.0  ;;  %v1018_v60 = vld [vmem:[%s3754_s1 + $0x1b0] sm:$0xff]  ;;  %v1023_v61 = vld [vmem:[%s3754_s1 + $0x1d8] sm:$0xff] }
  0x19   :  { %v1067_v12 = vrot.slane %v1066_v58, 2  ;;  %v1106_v17 = vadd.f32 %v1105_v56, %v1104_v8  ;;  %v1138_v23 = vadd.f32 %v1137_v9, %v1136_v14  ;;  %v1047_v25 = vadd.f32 %v1046_v6, %v1045_v50  ;;  %v1021_v50 = vld [vmem:[%s3754_s1 + $0x1c8] sm:$0xff]  ;;  %v1019_v3 = vld [vmem:[%s3754_s1 + $0x1b8] sm:$0xff]  ;;  %v1024_v9 = vld [vmem:[%s3754_s1 + $0x1e0] sm:$0xff] }
  0x1a   :  { %v1087_v16 = vadd.f32 %v1086_v7, %v1085_v59  ;;  %v1123_v22 = vadd.f32 %v1122_v2, %v1121_v13  ;;  %v1126_v27 = vsel %vm1028_vm1, %v1003_v10, 0.0  ;;  %v1141_v28 = vsel %vm1028_vm1, %v1008_v11, 0.0  ;;  %v858_v14 = vld [vmem:[%s3755_s4] sm:$0xff] }
  0x1b   :  { %v1107_v26 = vrot.slane %v1106_v17, 4  ;;  %v1068_v31 = vadd.f32 %v1067_v12, %v1066_v58  ;;  %v1140_v33 = vadd.f32 %v1139_v19, %v1138_v23  ;;  %v1155_v34 = vsel %vm1028_vm1, %v1012_v15, 0.0  ;;  %v859_v15 = vld [vmem:[%s3755_s4 + $0x8] sm:$0xff] }
  0x1c   :  { %v1125_v32 = vadd.f32 %v1124_v18, %v1123_v22  ;;  %v1088_v35 = vrot.slane %v1087_v16, 2  ;;  %v1143_v37 = vsel %vm1028_vm1, %v1009_v20, 0.0  ;;  %v1156_v38 = vsel %vm1028_vm1, %v1013_v21, 0.0  ;;  %v860_v21 = vld [vmem:[%s3755_s4 + $0x10] sm:$0xff] }
  0x1d   :  { %v1108_v36 = vadd.f32 %v1107_v26, %v1106_v17  ;;  %v1142_v42 = vadd.f32 %v1141_v28, %v1140_v33  ;;  %v1157_v43 = vadd.f32 %v1156_v38, %v1155_v34  ;;  %v1158_v44 = vsel %vm1028_vm1, %v1014_v24, 0.0  ;;  %v861_v26 = vld [vmem:[%s3755_s4 + $0x18] sm:$0xff]  ;;  %v50_v28 = vld [vmem:[%s3756_s0 + $0x8] sm:$0xff]  ;;  %v51_v33 = vld [vmem:[%s3756_s0 + $0x10] sm:$0xff]  ;;  %s1936_s4 = smov 96  }
  0x1e   :  { %v1127_v41 = vadd.f32 %v1126_v27, %v1125_v32  ;;  %v1145_v47 = vsel %vm1028_vm1, %v1010_v29, 0.0  ;;  %v1160_v48 = vsel %vm1028_vm1, %v1015_v30, 0.0  ;;  %v1048_v52 = vrot.slane %v1047_v25, 1  ;;  %v49_v27 = vld [vmem:[%s3756_s0] sm:$0xff]  ;;  %v1026_v34 = vld [vmem:[%s3754_s1 + $0x1f0] sm:$0xff] }
  0x1f   :  { %v1109_v46 = vrot.slane %v1108_v36, 2  ;;  %v1144_v54 = vadd.f32 %v1143_v37, %v1142_v42  ;;  %v1159_v55 = vadd.f32 %v1158_v44, %v1157_v43  ;;  %v1069_v56 = vrot.slane %v1068_v31, 1  ;;  %v1027_v44 = vld [vmem:[%s3754_s1 + $0x1f8] sm:$0xff] }
  0x20   :  { %v1128_v53 = vrot.slane %v1127_v41, 4  ;;  %v1089_v57 = vadd.f32 %v1088_v35, %v1087_v16  ;;  %v1147_v58 = vsel %vm1028_vm1, %v1011_v39, 0.0  ;;  %v1162_v59 = vsel %vm1028_vm1, %v1016_v40, 0.0  ;;  %v1025_v16 = vld [vmem:[%s3754_s1 + $0x1e8] sm:$0xff] }
  0x21   :  { %v1146_v63 = vadd.f32 %v1145_v47, %v1144_v54  ;;  %v1161_v1 = vadd.f32 %v1160_v48, %v1159_v55  ;;  %v1176_v2 = vsel %vm1028_vm1, %v1020_v45, 0.0  ;;  %v1110_v5 = vadd.f32 %v1109_v46, %v1108_v36 }
  0x22   :  { %v1129_v62 = vadd.f32 %v1128_v53, %v1127_v41  ;;  %v1164_v6 = vsel %vm1028_vm1, %v1017_v49, 0.0  ;;  %v1177_v7 = vsel %vm1028_vm1, %v1021_v50, 0.0  ;;  %v1179_v8 = vsel %vm1028_vm1, %v1022_v51, 0.0  ;;  %v52_v41 = vld [vmem:[%s3756_s0 + $0x18] sm:$0xff] }
  0x23   :  { %v1049_v10 = vadd.f32 %v1048_v52, %v1047_v25  ;;  %v1148_v11 = vadd.f32 %v1147_v58, %v1146_v63  ;;  %v1163_v12 = vadd.f32 %v1162_v59, %v1161_v1  ;;  %v1178_v13 = vadd.f32 %v1177_v7, %v1176_v2  ;;  %v53_v52 = vld [vmem:[%s3756_s0 + $0x20] sm:$0xff] }
  0x24   :  { %v1070_v17 = vadd.f32 %v1069_v56, %v1068_v31  ;;  %v1130_v18 = vrot.slane %v1129_v62, 2  ;;  %v1166_v19 = vsel %vm1028_vm1, %v1018_v60, 0.0  ;;  %v1181_v20 = vsel %vm1028_vm1, %v1023_v61, 0.0 }
  0x25   :  { %v1090_v22 = vrot.slane %v1089_v57, 1  ;;  %v1149_v23 = vrot.slane %v1148_v11, 4  ;;  %v1165_v24 = vadd.f32 %v1164_v6, %v1163_v12  ;;  %v1180_v25 = vadd.f32 %v1179_v8, %v1178_v13  ;;  %v55_v6 = vld [vmem:[%s3756_s0 + $0x30] sm:$0xff]  ;;  %v56_v12 = vld [vmem:[%s3756_s0 + $0x38] sm:$0xff] }
  0x26   :  { %v1111_v29 = vrot.slane %v1110_v5, 1  ;;  %v1168_v30 = vsel %vm1028_vm1, %v1019_v3, 0.0  ;;  %v1183_v31 = vsel %vm1028_vm1, %v1024_v9, 0.0  ;;  %v1861_v32 = vpack.c.bf16 %v859_v15, %v858_v14 }
  0x27   :  { %v1150_v35 = vadd.f32 %v1149_v23, %v1148_v11  ;;  %v1167_v36 = vadd.f32 %v1166_v19, %v1165_v24  ;;  %v1182_v37 = vadd.f32 %v1181_v20, %v1180_v25  ;;  %v1185_v38 = vsel %vm1028_vm1, %v1025_v16, 0.0  ;;  %v58_v25 = vld [vmem:[%s3756_s0 + $0x48] sm:$0xff] }
  0x28   :  { %v1131_v39 = vadd.f32 %v1130_v18, %v1129_v62  ;;  %1862 = vmatpush3.bf16.msra.mxu0 %v1861_v32  ;;  %v1864_v40 = vpack.c.bf16 %v861_v26, %v860_v21  ;;  %v306_v42 = vsel %vm305_vm2, %v49_v27, 0.0  ;;  %v307_v43 = vsel %vm305_vm2, %v50_v28, 0.0  ;;  %v57_v18 = vld [vmem:[%s3756_s0 + $0x40] sm:$0xff] }
  0x29   :  { %v1151_v45 = vrot.slane %v1150_v35, 2  ;;  %v1169_v46 = vadd.f32 %v1168_v30, %v1167_v36  ;;  %v1184_v47 = vadd.f32 %v1183_v31, %v1182_v37  ;;  %1863 = vmatprep.subr.bf16.mxu0 %v1932_v0  ;;  %v309_v48 = vsel %vm305_vm2, %v51_v33, 0.0  ;;  %v81_v28 = vld [vmem:[%s3756_s0 + $0x100] sm:$0xff]  ;;  %v83_v30 = vld [vmem:[%s3756_s0 + $0x110] sm:$0xff]  ;;  %v84_v37 = vld [vmem:[%s3756_s0 + $0x118] sm:$0xff] }
  0x2a   :  { %v1091_v49 = vadd.f32 %v1090_v22, %v1089_v57  ;;  %v1187_v50 = vsel %vm1028_vm1, %v1026_v34, 0.0  ;;  %v1220_v51 = vsel %vm877_vm3, %v1070_v17, %v1049_v10  ;;  %v308_v53 = vadd.f32 %v307_v43, %v306_v42  ;;  %v54_v57 = vld [vmem:[%s3756_s0 + $0x28] sm:$0xff]  ;;  %v59_v33 = vld [vmem:[%s3756_s0 + $0x50] sm:$0xff] }
  0x2b   :  { %v1152_v54 = vadd.f32 %v1151_v45, %v1150_v35  ;;  %v1170_v55 = vrot.slane %v1169_v46, 4  ;;  %v1186_v56 = vadd.f32 %v1185_v38, %v1184_v47  ;;  %v311_v58 = vsel %vm305_vm2, %v52_v41, 0.0  ;;  %v85_v45 = vld [vmem:[%s3756_s0 + $0x120] sm:$0xff] }
  0x2c   :  { %v1132_v59 = vrot.slane %v1131_v39, 1  ;;  %v1189_v60 = vsel %vm1028_vm1, %v1027_v44, 0.0  ;;  %1865 = vmatpush3.bf16.msra.mxu0 %v1864_v40  ;;  %v310_v61 = vadd.f32 %v309_v48, %v308_v53  ;;  %v1112_v62 = vadd.f32 %v1111_v29, %v1110_v5  ;;  %v82_v29 = vld [vmem:[%s3756_s0 + $0x108] sm:$0xff]  ;;  %v60_v44 = vld [vmem:[%s3756_s0 + $0x58] sm:$0xff] }
  0x2d   :  { %v1171_v63 = vadd.f32 %v1170_v55, %v1169_v46  ;;  %v1188_v1 = vadd.f32 %v1187_v50, %v1186_v56  ;;  %1878 = vmatprep.subr.bf16.mxu0 %v1932_v0  ;;  %v313_v2 = vsel %vm305_vm2, %v53_v52, 0.0  ;;  %v1221_v3 = vsel %vm879_vm4, %v1091_v49, %v1220_v51  ;;  %v86_v52 = vld [vmem:[%s3756_s0 + $0x128] sm:$0xff] }
  0x2e   :  { %v312_v7 = vadd.f32 %v311_v58, %v310_v61  ;;  %v1153_v8 = vrot.slane %v1152_v54, 1  ;;  %v315_v11 = vsel %vm305_vm2, %v54_v57, 0.0  ;;  %v1133_v5 = vadd.f32 %v1132_v59, %v1131_v39  ;;  %v61_v59 = vld [vmem:[%s3756_s0 + $0x60] sm:$0xff] }
  0x2f   :  { %v1172_v9 = vrot.slane %v1171_v63, 2  ;;  %v1190_v10 = vadd.f32 %v1189_v60, %v1188_v1  ;;  %v1222_v16 = vsel %vm881_vm5, %v1112_v62, %v1221_v3  ;;  %v317_v17 = vsel %vm305_vm2, %v55_v6, 0.0  ;;  %v87_v60 = vld [vmem:[%s3756_s0 + $0x130] sm:$0xff]  ;;  %v88_v62 = vld [vmem:[%s3756_s0 + $0x138] sm:$0xff]  ;;  %v113_v3 = vld [vmem:[%s3756_s0 + $0x200] sm:$0xff] }
  0x30   :  { %v314_v13 = vadd.f32 %v313_v2, %v312_v7  ;;  %v1154_v20 = vadd.f32 %v1153_v8, %v1152_v54  ;;  %v319_v23 = vsel %vm305_vm2, %v56_v12, 0.0  ;;  %v1223_v24 = vsel %vm883_vm6, %v1133_v5, %v1222_v16  ;;  %v62_v2 = vld [vmem:[%s3756_s0 + $0x68] sm:$0xff]  ;;  %v89_v8 = vld [vmem:[%s3756_s0 + $0x140] sm:$0xff] }
  0x31   :  { %v1173_v14 = vadd.f32 %v1172_v9, %v1171_v63  ;;  %v1191_v15 = vrot.slane %v1190_v10, 4  ;;  %v321_v31 = vsel %vm305_vm2, %v57_v18, 0.0  ;;  %v323_v38 = vsel %vm305_vm2, %v58_v25, 0.0  ;;  %v114_v9 = vld [vmem:[%s3756_s0 + $0x208] sm:$0xff] }
  0x32   :  { %v316_v19 = vadd.f32 %v315_v11, %v314_v13  ;;  %v1224_v36 = vsel %vm885_vm7, %v1154_v20, %v1223_v24  ;;  %v375_v40 = vsel %vm305_vm2, %v81_v28, 0.0  ;;  %v376_v41 = vsel %vm305_vm2, %v82_v29, 0.0  ;;  %v90_v12 = vld [vmem:[%s3756_s0 + $0x148] sm:$0xff]  ;;  %v116_v13 = vld [vmem:[%s3756_s0 + $0x218] sm:$0xff] }
  0x33   :  { %v1174_v21 = vrot.slane %v1173_v14, 1  ;;  %v1192_v22 = vadd.f32 %v1191_v15, %v1190_v10  ;;  %v378_v42 = vsel %vm305_vm2, %v83_v30, 0.0  ;;  %v325_v46 = vsel %vm305_vm2, %v59_v33, 0.0  ;;  %v115_v10 = vld [vmem:[%s3756_s0 + $0x210] sm:$0xff]  ;;  %v118_v28 = vld [vmem:[%s3756_s0 + $0x228] sm:$0xff] }
  0x34   :  { %v318_v26 = vadd.f32 %v317_v17, %v316_v19  ;;  %v377_v47 = vadd.f32 %v376_v41, %v375_v40  ;;  %v380_v50 = vsel %vm305_vm2, %v84_v37, 0.0  ;;  %v327_v55 = vsel %vm305_vm2, %v60_v44, 0.0  ;;  %v119_v37 = vld [vmem:[%s3756_s0 + $0x230] sm:$0xff]  ;;  %v120_v41 = vld [vmem:[%s3756_s0 + $0x238] sm:$0xff] }
  0x35   :  { %v1193_v27 = vrot.slane %v1192_v22, 2  ;;  %v1175_v32 = vadd.f32 %v1174_v21, %v1173_v14  ;;  %v382_v56 = vsel %vm305_vm2, %v85_v45, 0.0  ;;  %v384_v61 = vsel %vm305_vm2, %v86_v52, 0.0  ;;  %v63_v21 = vld [vmem:[%s3756_s0 + $0x70] sm:$0xff]  ;;  %v146_v52 = vld [vmem:[%s3756_s0 + $0x308] sm:$0xff] }
  0x36   :  { %v320_v34 = vadd.f32 %v319_v23, %v318_v26  ;;  %v379_v53 = vadd.f32 %v378_v42, %v377_v47  ;;  %v329_v6 = vsel %vm305_vm2, %v61_v59, 0.0  ;;  %v386_v7 = vsel %vm305_vm2, %v87_v60, 0.0  ;;  %v117_v23 = vld [vmem:[%s3756_s0 + $0x220] sm:$0xff]  ;;  %v148_v59 = vld [vmem:[%s3756_s0 + $0x318] sm:$0xff] }
  0x37   :  { %v1194_v35 = vadd.f32 %v1193_v27, %v1192_v22  ;;  %v1225_v48 = vsel %vm887_vm8, %v1175_v32, %v1224_v36  ;;  %v388_v5 = vsel %vm305_vm2, %v88_v62, 0.0  ;;  %v444_v16 = vsel %vm305_vm2, %v113_v3, 0.0  ;;  %v91_v22 = vld [vmem:[%s3756_s0 + $0x150] sm:$0xff]  ;;  %v92_v32 = vld [vmem:[%s3756_s0 + $0x158] sm:$0xff]  ;;  %v93_v47 = vld [vmem:[%s3756_s0 + $0x160] sm:$0xff] }
  0x38   :  { %v322_v39 = vadd.f32 %v321_v31, %v320_v34  ;;  %v381_v57 = vadd.f32 %v380_v50, %v379_v53  ;;  %v331_v17 = vsel %vm305_vm2, %v62_v2, 0.0  ;;  %v390_v18 = vsel %vm305_vm2, %v89_v8, 0.0  ;;  %v64_v36 = vld [vmem:[%s3756_s0 + $0x78] sm:$0xff]  ;;  %v121_v50 = vld [vmem:[%s3756_s0 + $0x240] sm:$0xff]  ;;  %v94_v62 = vld [vmem:[%s3756_s0 + $0x168] sm:$0xff] }
  0x39   :  { %v1195_v43 = vrot.slane %v1194_v35, 1  ;;  %v445_v19 = vsel %vm305_vm2, %v114_v9, 0.0  ;;  %v447_v20 = vsel %vm305_vm2, %v115_v10, 0.0  ;;  %v392_v26 = vsel %vm305_vm2, %v90_v12, 0.0  ;;  %v149_v8 = vld [vmem:[%s3756_s0 + $0x320] sm:$0xff] }
  0x3a   :  { %v324_v49 = vadd.f32 %v323_v38, %v322_v39  ;;  %v383_v1 = vadd.f32 %v382_v56, %v381_v57  ;;  %v446_v25 = vadd.f32 %v445_v19, %v444_v16  ;;  %v449_v27 = vsel %vm305_vm2, %v116_v13, 0.0 }
  0x3b   :  { %v1196_v51 = vadd.f32 %v1195_v43, %v1194_v35  ;;  %v333_v33 = vsel %vm305_vm2, %v63_v21, 0.0  ;;  %v394_v34 = vsel %vm305_vm2, %v91_v22, 0.0  ;;  %v451_v35 = vsel %vm305_vm2, %v117_v23, 0.0 }
  0x3c   :  { %v326_v54 = vadd.f32 %v325_v46, %v324_v49  ;;  %v385_v11 = vadd.f32 %v384_v61, %v383_v1  ;;  %v448_v31 = vadd.f32 %v447_v20, %v446_v25  ;;  %v453_v40 = vsel %vm305_vm2, %v118_v28, 0.0  ;;  %v65_v46 = vld [vmem:[%s3756_s0 + $0x80] sm:$0xff]  ;;  %v95_v20 = vld [vmem:[%s3756_s0 + $0x170] sm:$0xff] }
  0x3d   :  { %v1226_v58 = vsel %vm889_vm9, %v1196_v51, %v1225_v48  ;;  %v396_v44 = vsel %vm305_vm2, %v92_v32, 0.0  ;;  %v335_v48 = vsel %vm305_vm2, %v64_v36, 0.0  ;;  %v455_v49 = vsel %vm305_vm2, %v119_v37, 0.0  ;;  %v145_v51 = vld [vmem:[%s3756_s0 + $0x300] sm:$0xff]  ;;  %v152_v32 = vld [vmem:[%s3756_s0 + $0x338] sm:$0xff] }
  0x3e   :  { %1788 = vmatmul.mubr.msk.f32.vlgmr.msra.gmra.mrb[0].mxu1 %vm1028_vm1, %v1226_v58  ;;  %v328_v63 = vadd.f32 %v327_v55, %v326_v54  ;;  %v387_v15 = vadd.f32 %v386_v7, %v385_v11  ;;  %v450_v39 = vadd.f32 %v449_v27, %v448_v31  ;;  %v147_v54 = vld [vmem:[%s3756_s0 + $0x310] sm:$0xff]  ;;  %v457_v56 = vsel %vm305_vm2, %v120_v41, 0.0  ;;  %v122_v58 = vld [vmem:[%s3756_s0 + $0x248] sm:$0xff]  ;;  %v125_v25 = vld [vmem:[%s3756_s0 + $0x260] sm:$0xff] }
  0x3f   :  { %1857 = vmatprep.mubr.msk.f32.mxu1 %vm1933_vm0, %v1934_v4  ;;  %v398_v57 = vsel %vm305_vm2, %v93_v47, 0.0  ;;  %v459_v1 = vsel %vm305_vm2, %v121_v50, 0.0  ;;  %v513_v2 = vsel %vm305_vm2, %v145_v51, 0.0  ;;  %v514_v3 = vsel %vm305_vm2, %v146_v52, 0.0  ;;  %v123_v7 = vld [vmem:[%s3756_s0 + $0x250] sm:$0xff]  ;;  %v68_v37 = vld [vmem:[%s3756_s0 + $0x98] sm:$0xff] }
  0x40   :  { %v330_v14 = vadd.f32 %v329_v6, %v328_v63  ;;  %v389_v24 = vadd.f32 %v388_v5, %v387_v15  ;;  %v452_v45 = vadd.f32 %v451_v35, %v450_v39  ;;  %v337_v63 = vsel %vm305_vm2, %v65_v46, 0.0  ;;  %v66_v6 = vld [vmem:[%s3756_s0 + $0x88] sm:$0xff]  ;;  %v73_v52 = vld [vmem:[%s3756_s0 + $0xc0] sm:$0xff] }
  0x41   :  { %v515_v10 = vadd.f32 %v514_v3, %v513_v2  ;;  %v516_v11 = vsel %vm305_vm2, %v147_v54, 0.0  ;;  %v461_v12 = vsel %vm305_vm2, %v122_v58, 0.0  ;;  %v518_v13 = vsel %vm305_vm2, %v148_v59, 0.0  ;;  %v150_v15 = vld [vmem:[%s3756_s0 + $0x328] sm:$0xff]  ;;  %v155_v2 = vld [vmem:[%s3756_s0 + $0x350] sm:$0xff]  ;;  %v177_v3 = vld [vmem:[%s3756_s0 + $0x400] sm:$0xff] }
  0x42   :  { %v332_v29 = vadd.f32 %v331_v17, %v330_v14  ;;  %v391_v30 = vadd.f32 %v390_v18, %v389_v24  ;;  %v454_v53 = vadd.f32 %v453_v40, %v452_v45  ;;  %v124_v14 = vld [vmem:[%s3756_s0 + $0x258] sm:$0xff]  ;;  %v400_v17 = vsel %vm305_vm2, %v94_v62, 0.0  ;;  %v67_v24 = vld [vmem:[%s3756_s0 + $0x90] sm:$0xff]  ;;  %v70_v47 = vld [vmem:[%s3756_s0 + $0xa8] sm:$0xff] }
  0x43   :  { %v517_v19 = vadd.f32 %v516_v11, %v515_v10  ;;  %v339_v21 = vsel %vm305_vm2, %v66_v6, 0.0  ;;  %v463_v22 = vsel %vm305_vm2, %v123_v7, 0.0  ;;  %v520_v23 = vsel %vm305_vm2, %v149_v8, 0.0  ;;  %v154_v54 = vld [vmem:[%s3756_s0 + $0x348] sm:$0xff]  ;;  %v75_v11 = vld [vmem:[%s3756_s0 + $0xd0] sm:$0xff] }
  0x44   :  { %v393_v38 = vadd.f32 %v392_v26, %v391_v30  ;;  %v334_v42 = vadd.f32 %v333_v33, %v332_v29  ;;  %v456_v61 = vadd.f32 %v455_v49, %v454_v53  ;;  %v151_v26 = vld [vmem:[%s3756_s0 + $0x330] sm:$0xff]  ;;  %v465_v30 = vsel %vm305_vm2, %v124_v14, 0.0  ;;  %v72_v49 = vld [vmem:[%s3756_s0 + $0xb8] sm:$0xff]  ;;  %v74_v53 = vld [vmem:[%s3756_s0 + $0xc8] sm:$0xff] }
  0x45   :  { %v519_v28 = vadd.f32 %v518_v13, %v517_v19  ;;  %v522_v31 = vsel %vm305_vm2, %v150_v15, 0.0  ;;  %v341_v39 = vsel %vm305_vm2, %v67_v24, 0.0  ;;  %v467_v40 = vsel %vm305_vm2, %v125_v25, 0.0  ;;  %v178_v6 = vld [vmem:[%s3756_s0 + $0x408] sm:$0xff] }
  0x46   :  { %v395_v43 = vadd.f32 %v394_v34, %v393_v38  ;;  %v336_v60 = vadd.f32 %v335_v48, %v334_v42  ;;  %v458_v9 = vadd.f32 %v457_v56, %v456_v61  ;;  %v402_v34 = vsel %vm305_vm2, %v95_v20, 0.0  ;;  %v96_v38 = vld [vmem:[%s3756_s0 + $0x178] sm:$0xff]  ;;  %v69_v42 = vld [vmem:[%s3756_s0 + $0xa0] sm:$0xff]  ;;  %v71_v48 = vld [vmem:[%s3756_s0 + $0xb0] sm:$0xff] }
  0x47   :  { %v521_v36 = vadd.f32 %v520_v23, %v519_v28  ;;  %v524_v41 = vsel %vm305_vm2, %v151_v26, 0.0  ;;  %v526_v51 = vsel %vm305_vm2, %v152_v32, 0.0  ;;  %v404_v56 = vsel %vm305_vm2, %v96_v38, 0.0  ;;  %v76_v23 = vld [vmem:[%s3756_s0 + $0xd8] sm:$0xff] }
  0x48   :  { %v397_v55 = vadd.f32 %v396_v44, %v395_v43  ;;  %v338_v16 = vadd.f32 %v337_v63, %v336_v60  ;;  %v460_v18 = vadd.f32 %v459_v1, %v458_v9  ;;  %v126_v43 = vld [vmem:[%s3756_s0 + $0x268] sm:$0xff]  ;;  %v153_v44 = vld [vmem:[%s3756_s0 + $0x340] sm:$0xff]  ;;  %v343_v61 = vsel %vm305_vm2, %v68_v37, 0.0  ;;  %v128_v28 = vld [vmem:[%s3756_s0 + $0x278] sm:$0xff] }
  0x49   :  { %v523_v46 = vadd.f32 %v522_v31, %v521_v36  ;;  %v97_v60 = vld [vmem:[%s3756_s0 + $0x180] sm:$0xff]  ;;  %v345_v62 = vsel %vm305_vm2, %v69_v42, 0.0  ;;  %v469_v63 = vsel %vm305_vm2, %v126_v43, 0.0  ;;  %v528_v1 = vsel %vm305_vm2, %v153_v44, 0.0  ;;  %v78_v36 = vld [vmem:[%s3756_s0 + $0xe8] sm:$0xff] }
  0x4a   :  { %v399_v5 = vadd.f32 %v398_v57, %v397_v55  ;;  %v462_v27 = vadd.f32 %v461_v12, %v460_v18  ;;  %v340_v33 = vadd.f32 %v339_v21, %v338_v16  ;;  %v127_v57 = vld [vmem:[%s3756_s0 + $0x270] sm:$0xff]  ;;  %v2601_v7 = vsel %vm305_vm2, %v70_v47, 0.0  ;;  %v156_v16 = vld [vmem:[%s3756_s0 + $0x358] sm:$0xff]  ;;  %v158_v42 = vld [vmem:[%s3756_s0 + $0x368] sm:$0xff] }
  0x4b   :  { %v525_v59 = vadd.f32 %v524_v41, %v523_v46  ;;  %v2604_v8 = vsel %vm305_vm2, %v71_v48, 0.0  ;;  %v2607_v9 = vsel %vm305_vm2, %v72_v49, 0.0  ;;  %v2616_v12 = vsel %vm305_vm2, %v73_v52, 0.0  ;;  %v180_v18 = vld [vmem:[%s3756_s0 + $0x418] sm:$0xff]  ;;  %v99_v41 = vld [vmem:[%s3756_s0 + $0x190] sm:$0xff]  ;;  %v182_v43 = vld [vmem:[%s3756_s0 + $0x428] sm:$0xff] }
  0x4c   :  { %v401_v29 = vadd.f32 %v400_v17, %v399_v5  ;;  %v464_v35 = vadd.f32 %v463_v22, %v462_v27  ;;  %v342_v55 = vadd.f32 %v341_v39, %v340_v33  ;;  %v98_v5 = vld [vmem:[%s3756_s0 + $0x188] sm:$0xff]  ;;  %v2619_v13 = vsel %vm305_vm2, %v74_v53, 0.0  ;;  %v179_v17 = vld [vmem:[%s3756_s0 + $0x410] sm:$0xff]  ;;  %v129_v53 = vld [vmem:[%s3756_s0 + $0x280] sm:$0xff] }
  0x4d   :  { %v527_v10 = vadd.f32 %v526_v51, %v525_v59  ;;  %v530_v15 = vsel %vm305_vm2, %v154_v54, 0.0  ;;  %v406_v20 = vsel %vm305_vm2, %v97_v60, 0.0  ;;  %v471_v24 = vsel %vm305_vm2, %v127_v57, 0.0  ;;  %v79_v48 = vld [vmem:[%s3756_s0 + $0xf0] sm:$0xff]  ;;  %v80_v57 = vld [vmem:[%s3756_s0 + $0xf8] sm:$0xff] }
  0x4e   :  { %v466_v45 = vadd.f32 %v465_v30, %v464_v35  ;;  %v403_v50 = vadd.f32 %v402_v34, %v401_v29  ;;  %v344_v19 = vadd.f32 %v343_v61, %v342_v55  ;;  %v532_v25 = vsel %vm305_vm2, %v155_v2, 0.0  ;;  %v157_v29 = vld [vmem:[%s3756_s0 + $0x360] sm:$0xff]  ;;  %v159_v54 = vld [vmem:[%s3756_s0 + $0x370] sm:$0xff]  ;;  %v100_v61 = vld [vmem:[%s3756_s0 + $0x198] sm:$0xff] }
  0x4f   :  { %v529_v22 = vadd.f32 %v528_v1, %v527_v10  ;;  %v582_v26 = vsel %vm305_vm2, %v177_v3, 0.0  ;;  %v583_v27 = vsel %vm305_vm2, %v178_v6, 0.0  ;;  %v181_v30 = vld [vmem:[%s3756_s0 + $0x420] sm:$0xff]  ;;  %v2649_v31 = vsel %vm305_vm2, %v75_v11, 0.0  ;;  %v183_v55 = vld [vmem:[%s3756_s0 + $0x430] sm:$0xff]  ;;  %v160_v6 = vld [vmem:[%s3756_s0 + $0x378] sm:$0xff] }
  0x50   :  { %v468_v58 = vadd.f32 %v467_v40, %v466_v45  ;;  %v405_v14 = vadd.f32 %v404_v56, %v403_v50  ;;  %v408_v32 = vsel %vm305_vm2, %v98_v5, 0.0  ;;  %v584_v34 = vadd.f32 %v583_v27, %v582_v26  ;;  %v77_v35 = vld [vmem:[%s3756_s0 + $0xe0] sm:$0xff]  ;;  %v184_v10 = vld [vmem:[%s3756_s0 + $0x438] sm:$0xff]  ;;  %v103_v27 = vld [vmem:[%s3756_s0 + $0x1b0] sm:$0xff] }
  0x51   :  { %v531_v33 = vadd.f32 %v530_v15, %v529_v22  ;;  %v534_v38 = vsel %vm305_vm2, %v156_v16, 0.0  ;;  %v585_v39 = vsel %vm305_vm2, %v179_v17, 0.0  ;;  %v587_v40 = vsel %vm305_vm2, %v180_v18, 0.0  ;;  %v101_v3 = vld [vmem:[%s3756_s0 + $0x1a0] sm:$0xff]  ;;  %v102_v16 = vld [vmem:[%s3756_s0 + $0x1a8] sm:$0xff] }
  0x52   :  { %v470_v21 = vadd.f32 %v469_v63, %v468_v58  ;;  %v407_v37 = vadd.f32 %v406_v20, %v405_v14  ;;  %v346_v44 = vadd.f32 %v345_v62, %v344_v19  ;;  %v586_v47 = vadd.f32 %v585_v39, %v584_v34  ;;  %v185_v22 = vld [vmem:[%s3756_s0 + $0x440] sm:$0xff] }
  0x53   :  { %v533_v46 = vadd.f32 %v532_v25, %v531_v33  ;;  %v2674_v49 = vsel %vm305_vm2, %v76_v23, 0.0  ;;  %v473_v50 = vsel %vm305_vm2, %v128_v28, 0.0  ;;  %v536_v51 = vsel %vm305_vm2, %v157_v29, 0.0  ;;  %v104_v28 = vld [vmem:[%s3756_s0 + $0x1b8] sm:$0xff]  ;;  %v105_v34 = vld [vmem:[%s3756_s0 + $0x1c0] sm:$0xff] }
  0x54   :  { %v472_v45 = vadd.f32 %v471_v24, %v470_v21  ;;  %v589_v52 = vsel %vm305_vm2, %v181_v30, 0.0  ;;  %v2689_v56 = vsel %vm305_vm2, %v77_v35, 0.0  ;;  %v2692_v58 = vsel %vm305_vm2, %v78_v36, 0.0  ;;  %v161_v21 = vld [vmem:[%s3756_s0 + $0x380] sm:$0xff]  ;;  %v162_v35 = vld [vmem:[%s3756_s0 + $0x388] sm:$0xff] }
  0x55   :  { %v535_v59 = vadd.f32 %v534_v38, %v533_v46  ;;  %v588_v60 = vadd.f32 %v587_v40, %v586_v47  ;;  %v409_v62 = vadd.f32 %v408_v32, %v407_v37  ;;  %v410_v63 = vsel %vm305_vm2, %v99_v41, 0.0  ;;  %v186_v36 = vld [vmem:[%s3756_s0 + $0x448] sm:$0xff]  ;;  %v131_v46 = vld [vmem:[%s3756_s0 + $0x290] sm:$0xff] }
  0x56   :  { %v538_v1 = vsel %vm305_vm2, %v158_v42, 0.0  ;;  %v591_v2 = vsel %vm305_vm2, %v182_v43, 0.0  ;;  %v348_v11 = vadd.f32 %v2601_v7, %v346_v44  ;;  %v474_v5 = vadd.f32 %v473_v50, %v472_v45  ;;  %v130_v7 = vld [vmem:[%s3756_s0 + $0x288] sm:$0xff]  ;;  %v187_v47 = vld [vmem:[%s3756_s0 + $0x450] sm:$0xff] }
  0x57   :  { %v537_v14 = vadd.f32 %v536_v51, %v535_v59  ;;  %v590_v15 = vadd.f32 %v589_v52, %v588_v60  ;;  %v2717_v17 = vsel %vm305_vm2, %v79_v48, 0.0  ;;  %v475_v18 = vsel %vm305_vm2, %v129_v53, 0.0  ;;  %v106_v41 = vld [vmem:[%s3756_s0 + $0x1c8] sm:$0xff]  ;;  %v108_v53 = vld [vmem:[%s3756_s0 + $0x1d8] sm:$0xff] }
  0x58   :  { %v540_v19 = vsel %vm305_vm2, %v159_v54, 0.0  ;;  %v593_v20 = vsel %vm305_vm2, %v183_v55, 0.0  ;;  %v2732_v23 = vsel %vm305_vm2, %v80_v57, 0.0  ;;  %v412_v24 = vsel %vm305_vm2, %v100_v61, 0.0  ;;  %v109_v54 = vld [vmem:[%s3756_s0 + $0x1e0] sm:$0xff]  ;;  %v110_v61 = vld [vmem:[%s3756_s0 + $0x1e8] sm:$0xff] }
  0x59   :  { %v539_v25 = vadd.f32 %v538_v1, %v537_v14  ;;  %v592_v26 = vadd.f32 %v591_v2, %v590_v15  ;;  %v411_v29 = vadd.f32 %v410_v63, %v409_v62  ;;  %v414_v30 = vsel %vm305_vm2, %v101_v3, 0.0  ;;  %v163_v62 = vld [vmem:[%s3756_s0 + $0x390] sm:$0xff]  ;;  %v188_v63 = vld [vmem:[%s3756_s0 + $0x458] sm:$0xff] }
  0x5a   :  { %v542_v32 = vsel %vm305_vm2, %v160_v6, 0.0  ;;  %v595_v33 = vsel %vm305_vm2, %v184_v10, 0.0  ;;  %v350_v37 = vadd.f32 %v2604_v8, %v348_v11  ;;  %v476_v38 = vadd.f32 %v475_v18, %v474_v5  ;;  %v107_v8 = vld [vmem:[%s3756_s0 + $0x1d0] sm:$0xff]  ;;  %v112_v11 = vld [vmem:[%s3756_s0 + $0x1f8] sm:$0xff]  ;;  %v133_v18 = vld [vmem:[%s3756_s0 + $0x2a0] sm:$0xff] }
  0x5b   :  { %v541_v39 = vadd.f32 %v540_v19, %v539_v25  ;;  %v594_v40 = vadd.f32 %v593_v20, %v592_v26  ;;  %v2758_v42 = vsel %vm305_vm2, %v102_v16, 0.0  ;;  %v477_v43 = vsel %vm305_vm2, %v130_v7, 0.0  ;;  %v111_v10 = vld [vmem:[%s3756_s0 + $0x1f0] sm:$0xff]  ;;  %v132_v16 = vld [vmem:[%s3756_s0 + $0x298] sm:$0xff]  ;;  %v189_v19 = vld [vmem:[%s3756_s0 + $0x460] sm:$0xff] }
  0x5c   :  { %v544_v44 = vsel %vm305_vm2, %v161_v21, 0.0  ;;  %v597_v45 = vsel %vm305_vm2, %v185_v22, 0.0  ;;  %v2773_v48 = vsel %vm305_vm2, %v103_v27, 0.0  ;;  %v2776_v50 = vsel %vm305_vm2, %v104_v28, 0.0  ;;  %v164_v25 = vld [vmem:[%s3756_s0 + $0x398] sm:$0xff] }
  0x5d   :  { %v543_v51 = vadd.f32 %v542_v32, %v541_v39  ;;  %v596_v52 = vadd.f32 %v595_v33, %v594_v40  ;;  %v413_v55 = vadd.f32 %v412_v24, %v411_v29  ;;  %v2785_v59 = vsel %vm305_vm2, %v105_v34, 0.0  ;;  %v134_v24 = vld [vmem:[%s3756_s0 + $0x2a8] sm:$0xff]  ;;  %v209_v33 = vld [vmem:[%s3756_s0 + $0x500] sm:$0xff] }
  0x5e   :  { %v546_v60 = vsel %vm305_vm2, %v162_v35, 0.0  ;;  %v599_v57 = vsel %vm305_vm2, %v186_v36, 0.0  ;;  %v352_v1 = vadd.f32 %v2607_v9, %v350_v37  ;;  %v478_v2 = vadd.f32 %v477_v43, %v476_v38  ;;  %v190_v32 = vld [vmem:[%s3756_s0 + $0x468] sm:$0xff]  ;;  %v211_v38 = vld [vmem:[%s3756_s0 + $0x510] sm:$0xff] }
  0x5f   :  { %v545_v3 = vadd.f32 %v544_v44, %v543_v51  ;;  %v598_v6 = vadd.f32 %v597_v45, %v596_v52  ;;  %v2806_v5 = vsel %vm305_vm2, %v106_v41, 0.0  ;;  %v2809_v14 = vsel %vm305_vm2, %v107_v8, 0.0  ;;  %v210_v34 = vld [vmem:[%s3756_s0 + $0x508] sm:$0xff]  ;;  %v136_v44 = vld [vmem:[%s3756_s0 + $0x2b8] sm:$0xff]  ;;  %v191_v45 = vld [vmem:[%s3756_s0 + $0x470] sm:$0xff] }
  0x60   :  { %v479_v15 = vsel %vm305_vm2, %v131_v46, 0.0  ;;  %v601_v9 = vsel %vm305_vm2, %v187_v47, 0.0  ;;  %v2823_v20 = vsel %vm305_vm2, %v108_v53, 0.0  ;;  %v2826_v7 = vsel %vm305_vm2, %v109_v54, 0.0  ;;  %v137_v52 = vld [vmem:[%s3756_s0 + $0x2c0] sm:$0xff]  ;;  %v212_v53 = vld [vmem:[%s3756_s0 + $0x518] sm:$0xff] }
  0x61   :  { %v547_v21 = vadd.f32 %v546_v60, %v545_v3  ;;  %v600_v22 = vadd.f32 %v599_v57, %v598_v6  ;;  %v415_v26 = vadd.f32 %v414_v30, %v413_v55  ;;  %v2835_v27 = vsel %vm305_vm2, %v110_v61, 0.0  ;;  %v165_v61 = vld [vmem:[%s3756_s0 + $0x3a0] sm:$0xff] }
  0x62   :  { %v548_v28 = vsel %vm305_vm2, %v163_v62, 0.0  ;;  %v603_v29 = vsel %vm305_vm2, %v188_v63, 0.0  ;;  %v354_v30 = vadd.f32 %v2616_v12, %v352_v1  ;;  %v2850_v35 = vsel %vm305_vm2, %v111_v10, 0.0  ;;  %v135_v12 = vld [vmem:[%s3756_s0 + $0x2b0] sm:$0xff]  ;;  %v192_v62 = vld [vmem:[%s3756_s0 + $0x478] sm:$0xff]  ;;  %v213_v3 = vld [vmem:[%s3756_s0 + $0x520] sm:$0xff] }
  0x63   :  { %v480_v36 = vadd.f32 %v479_v15, %v478_v2  ;;  %v602_v37 = vadd.f32 %v601_v9, %v600_v22  ;;  %v2856_v39 = vsel %vm305_vm2, %v112_v11, 0.0  ;;  %v481_v40 = vsel %vm305_vm2, %v132_v16, 0.0  ;;  %v139_v9 = vld [vmem:[%s3756_s0 + $0x2d0] sm:$0xff]  ;;  %v193_v16 = vld [vmem:[%s3756_s0 + $0x480] sm:$0xff] }
  0x64   :  { %v483_v41 = vsel %vm305_vm2, %v133_v18, 0.0  ;;  %v605_v43 = vsel %vm305_vm2, %v189_v19, 0.0  ;;  %v485_v8 = vsel %vm305_vm2, %v134_v24, 0.0  ;;  %v549_v46 = vadd.f32 %v548_v28, %v547_v21  ;;  %v140_v24 = vld [vmem:[%s3756_s0 + $0x2d8] sm:$0xff] }
  0x65   :  { %v550_v47 = vsel %vm305_vm2, %v164_v25, 0.0  ;;  %v604_v51 = vadd.f32 %v603_v29, %v602_v37  ;;  %v417_v54 = vadd.f32 %v2758_v42, %v415_v26  ;;  %v607_v55 = vsel %vm305_vm2, %v190_v32, 0.0  ;;  %v214_v25 = vld [vmem:[%s3756_s0 + $0x528] sm:$0xff] }
  0x66   :  { %v651_v60 = vsel %vm305_vm2, %v209_v33, 0.0  ;;  %v652_v57 = vsel %vm305_vm2, %v210_v34, 0.0  ;;  %v356_v63 = vadd.f32 %v2619_v13, %v354_v30  ;;  %v482_v1 = vadd.f32 %v481_v40, %v480_v36  ;;  %v138_v13 = vld [vmem:[%s3756_s0 + $0x2c8] sm:$0xff] }
  0x67   :  { %v606_v2 = vadd.f32 %v605_v43, %v604_v51  ;;  %v654_v42 = vsel %vm305_vm2, %v211_v38, 0.0  ;;  %v2894_v6 = vsel %vm305_vm2, %v135_v12, 0.0  ;;  %v2897_v10 = vsel %vm305_vm2, %v136_v44, 0.0  ;;  %v166_v33 = vld [vmem:[%s3756_s0 + $0x3a8] sm:$0xff] }
  0x68   :  { %v609_v11 = vsel %vm305_vm2, %v191_v45, 0.0  ;;  %v653_v15 = vadd.f32 %v652_v57, %v651_v60  ;;  %v2910_v18 = vsel %vm305_vm2, %v137_v52, 0.0  ;;  %v551_v19 = vadd.f32 %v550_v47, %v549_v46  ;;  %v194_v34 = vld [vmem:[%s3756_s0 + $0x488] sm:$0xff]  ;;  %v195_v45 = vld [vmem:[%s3756_s0 + $0x490] sm:$0xff] }
  0x69   :  { %v608_v21 = vadd.f32 %v607_v55, %v606_v2  ;;  %v656_v22 = vsel %vm305_vm2, %v212_v53, 0.0  ;;  %v419_v26 = vadd.f32 %v2773_v48, %v417_v54  ;;  %v552_v28 = vsel %vm305_vm2, %v165_v61, 0.0  ;;  %v215_v48 = vld [vmem:[%s3756_s0 + $0x530] sm:$0xff]  ;;  %v216_v54 = vld [vmem:[%s3756_s0 + $0x538] sm:$0xff] }
  0x6a   :  { %v611_v29 = vsel %vm305_vm2, %v192_v62, 0.0  ;;  %v655_v32 = vadd.f32 %v654_v42, %v653_v15  ;;  %v358_v30 = vadd.f32 %v2649_v31, %v356_v63  ;;  %v484_v36 = vadd.f32 %v483_v41, %v482_v1  ;;  %v141_v31 = vld [vmem:[%s3756_s0 + $0x2e0] sm:$0xff]  ;;  %v142_v41 = vld [vmem:[%s3756_s0 + $0x2e8] sm:$0xff]  ;;  %v143_v53 = vld [vmem:[%s3756_s0 + $0x2f0] sm:$0xff] }
  0x6b   :  { %v610_v37 = vadd.f32 %v609_v11, %v608_v21  ;;  %v658_v38 = vsel %vm305_vm2, %v213_v3, 0.0  ;;  %v2934_v40 = vsel %vm305_vm2, %v138_v13, 0.0  ;;  %v2937_v43 = vsel %vm305_vm2, %v139_v9, 0.0  ;;  %v167_v62 = vld [vmem:[%s3756_s0 + $0x3b0] sm:$0xff]  ;;  %v196_v63 = vld [vmem:[%s3756_s0 + $0x498] sm:$0xff] }
  0x6c   :  { %v613_v12 = vsel %vm305_vm2, %v193_v16, 0.0  ;;  %v657_v44 = vadd.f32 %v656_v22, %v655_v32  ;;  %v2950_v46 = vsel %vm305_vm2, %v140_v24, 0.0  ;;  %v553_v47 = vadd.f32 %v552_v28, %v551_v19  ;;  %v197_v16 = vld [vmem:[%s3756_s0 + $0x4a0] sm:$0xff] }
  0x6d   :  { %v612_v51 = vadd.f32 %v611_v29, %v610_v37  ;;  %v660_v52 = vsel %vm305_vm2, %v214_v25, 0.0  ;;  %v421_v55 = vadd.f32 %v2776_v50, %v419_v26  ;;  %v554_v60 = vsel %vm305_vm2, %v166_v33, 0.0  ;;  %v217_v50 = vld [vmem:[%s3756_s0 + $0x540] sm:$0xff]  ;;  %v218_v26 = vld [vmem:[%s3756_s0 + $0x548] sm:$0xff] }
  0x6e   :  { %v615_v57 = vsel %vm305_vm2, %v194_v34, 0.0  ;;  %v659_v61 = vadd.f32 %v658_v38, %v657_v44  ;;  %v360_v1 = vadd.f32 %v2674_v49, %v358_v30  ;;  %v486_v2 = vadd.f32 %v485_v8, %v484_v36  ;;  %v144_v49 = vld [vmem:[%s3756_s0 + $0x2f8] sm:$0xff]  ;;  %v169_v25 = vld [vmem:[%s3756_s0 + $0x3c0] sm:$0xff]  ;;  %v170_v34 = vld [vmem:[%s3756_s0 + $0x3c8] sm:$0xff] }
  0x6f   :  { %v614_v42 = vadd.f32 %v613_v12, %v612_v51  ;;  %v662_v3 = vsel %vm305_vm2, %v215_v48, 0.0  ;;  %v2974_v11 = vsel %vm305_vm2, %v141_v31, 0.0  ;;  %v2977_v15 = vsel %vm305_vm2, %v142_v41, 0.0  ;;  %v168_v8 = vld [vmem:[%s3756_s0 + $0x3b8] sm:$0xff]  ;;  %v198_v30 = vld [vmem:[%s3756_s0 + $0x4a8] sm:$0xff]  ;;  %v219_v48 = vld [vmem:[%s3756_s0 + $0x550] sm:$0xff] }
  0x70   :  { %v617_v13 = vsel %vm305_vm2, %v195_v45, 0.0  ;;  %v661_v9 = vadd.f32 %v660_v52, %v659_v61  ;;  %v2990_v19 = vsel %vm305_vm2, %v143_v53, 0.0  ;;  %v555_v21 = vadd.f32 %v554_v60, %v553_v47  ;;  %v242_v45 = vld [vmem:[%s3756_s0 + $0x608] sm:$0xff] }
  0x71   :  { %v616_v22 = vadd.f32 %v615_v57, %v614_v42  ;;  %v664_v24 = vsel %vm305_vm2, %v216_v54, 0.0  ;;  %v423_v28 = vadd.f32 %v2785_v59, %v421_v55  ;;  %v556_v29 = vsel %vm305_vm2, %v167_v62, 0.0  ;;  %v220_v54 = vld [vmem:[%s3756_s0 + $0x558] sm:$0xff]  ;;  %v243_v62 = vld [vmem:[%s3756_s0 + $0x610] sm:$0xff] }
  0x72   :  { %v619_v32 = vsel %vm305_vm2, %v196_v63, 0.0  ;;  %v663_v33 = vadd.f32 %v662_v3, %v661_v9  ;;  %v362_v36 = vadd.f32 %v2689_v56, %v360_v1  ;;  %v488_v37 = vadd.f32 %v2894_v6, %v486_v2  ;;  %v199_v56 = vld [vmem:[%s3756_s0 + $0x4b0] sm:$0xff]  ;;  %v241_v6 = vld [vmem:[%s3756_s0 + $0x600] sm:$0xff]  ;;  %v244_v63 = vld [vmem:[%s3756_s0 + $0x618] sm:$0xff] }
  0x73   :  { %v618_v38 = vadd.f32 %v617_v13, %v616_v22  ;;  %v666_v59 = vsel %vm305_vm2, %v217_v50, 0.0  ;;  %v3015_v12 = vsel %vm305_vm2, %v144_v49, 0.0  ;;  %v558_v44 = vsel %vm305_vm2, %v168_v8, 0.0  ;;  %v171_v3 = vld [vmem:[%s3756_s0 + $0x3d0] sm:$0xff]  ;;  %v221_v50 = vld [vmem:[%s3756_s0 + $0x560] sm:$0xff] }
  0x74   :  { %v621_v31 = vsel %vm305_vm2, %v197_v16, 0.0  ;;  %v665_v41 = vadd.f32 %v664_v24, %v663_v33  ;;  %v557_v47 = vadd.f32 %v556_v29, %v555_v21  ;;  %v560_v51 = vsel %vm305_vm2, %v169_v25, 0.0  ;;  %v245_v8 = vld [vmem:[%s3756_s0 + $0x620] sm:$0xff]  ;;  %v200_v25 = vld [vmem:[%s3756_s0 + $0x4b8] sm:$0xff] }
  0x75   :  { %v620_v52 = vadd.f32 %v619_v32, %v618_v38  ;;  %v668_v53 = vsel %vm305_vm2, %v218_v26, 0.0  ;;  %v425_v55 = vadd.f32 %v2806_v5, %v423_v28  ;;  %v3035_v60 = vsel %vm305_vm2, %v170_v34, 0.0  ;;  %v222_v26 = vld [vmem:[%s3756_s0 + $0x568] sm:$0xff] }
  0x76   :  { %v623_v57 = vsel %vm305_vm2, %v198_v30, 0.0  ;;  %v667_v61 = vadd.f32 %v666_v59, %v665_v41  ;;  %v364_v1 = vadd.f32 %v2692_v58, %v362_v36  ;;  %v490_v2 = vadd.f32 %v2897_v10, %v488_v37  ;;  %v172_v10 = vld [vmem:[%s3756_s0 + $0x3d8] sm:$0xff]  ;;  %v246_v34 = vld [vmem:[%s3756_s0 + $0x628] sm:$0xff]  ;;  %v223_v59 = vld [vmem:[%s3756_s0 + $0x570] sm:$0xff] }
  0x77   :  { %v622_v42 = vadd.f32 %v621_v31, %v620_v52  ;;  %v670_v5 = vsel %vm305_vm2, %v219_v48, 0.0  ;;  %v625_v13 = vsel %vm305_vm2, %v199_v56, 0.0  ;;  %v720_v49 = vsel %vm305_vm2, %v241_v6, 0.0  ;;  %v174_v41 = vld [vmem:[%s3756_s0 + $0x3e8] sm:$0xff]  ;;  %v247_v56 = vld [vmem:[%s3756_s0 + $0x630] sm:$0xff] }
  0x78   :  { %v669_v9 = vadd.f32 %v668_v53, %v667_v61  ;;  %v721_v58 = vsel %vm305_vm2, %v242_v45, 0.0  ;;  %v559_v16 = vadd.f32 %v558_v44, %v557_v47  ;;  %v672_v22 = vsel %vm305_vm2, %v220_v54, 0.0  ;;  %v201_v53 = vld [vmem:[%s3756_s0 + $0x4c0] sm:$0xff]  ;;  %v224_v54 = vld [vmem:[%s3756_s0 + $0x578] sm:$0xff] }
  0x79   :  { %v624_v21 = vadd.f32 %v623_v57, %v622_v42  ;;  %v722_v24 = vadd.f32 %v721_v58, %v720_v49  ;;  %v427_v28 = vadd.f32 %v2809_v14, %v425_v55  ;;  %v723_v32 = vsel %vm305_vm2, %v243_v62, 0.0  ;;  %v173_v14 = vld [vmem:[%s3756_s0 + $0x3e0] sm:$0xff]  ;;  %v248_v62 = vld [vmem:[%s3756_s0 + $0x638] sm:$0xff] }
  0x7a   :  { %v671_v29 = vadd.f32 %v670_v5, %v669_v9  ;;  %v725_v33 = vsel %vm305_vm2, %v244_v63, 0.0  ;;  %v492_v30 = vadd.f32 %v2910_v18, %v490_v2  ;;  %v564_v36 = vsel %vm305_vm2, %v171_v3, 0.0  ;;  %v249_v9 = vld [vmem:[%s3756_s0 + $0x640] sm:$0xff] }
  0x7b   :  { %v674_v37 = vsel %vm305_vm2, %v221_v50, 0.0  ;;  %v724_v38 = vadd.f32 %v723_v32, %v722_v24  ;;  %v3085_v48 = vsel %vm305_vm2, %v172_v10, 0.0  ;;  %v626_v44 = vadd.f32 %v625_v13, %v624_v21  ;;  %v176_v13 = vld [vmem:[%s3756_s0 + $0x3f8] sm:$0xff]  ;;  %v226_v21 = vld [vmem:[%s3756_s0 + $0x588] sm:$0xff] }
  0x7c   :  { %v673_v31 = vadd.f32 %v672_v22, %v671_v29  ;;  %v727_v18 = vsel %vm305_vm2, %v245_v8, 0.0  ;;  %v561_v6 = vadd.f32 %v560_v51, %v559_v16  ;;  %v627_v45 = vsel %vm305_vm2, %v200_v25, 0.0  ;;  %v202_v16 = vld [vmem:[%s3756_s0 + $0x4c8] sm:$0xff] }
  0x7d   :  { %v676_v47 = vsel %vm305_vm2, %v222_v26, 0.0  ;;  %v726_v52 = vadd.f32 %v725_v33, %v724_v38  ;;  %v366_v55 = vadd.f32 %v2717_v17, %v364_v1  ;;  %v429_v57 = vadd.f32 %v2823_v20, %v427_v28  ;;  %v175_v17 = vld [vmem:[%s3756_s0 + $0x3f0] sm:$0xff]  ;;  %v225_v20 = vld [vmem:[%s3756_s0 + $0x580] sm:$0xff]  ;;  %v250_v26 = vld [vmem:[%s3756_s0 + $0x648] sm:$0xff] }
  0x7e   :  { %v675_v61 = vadd.f32 %v674_v37, %v673_v31  ;;  %v729_v51 = vsel %vm305_vm2, %v246_v34, 0.0  ;;  %v494_v63 = vadd.f32 %v2934_v40, %v492_v30  ;;  %v3110_v2 = vsel %vm305_vm2, %v173_v14, 0.0  ;;  %v204_v38 = vld [vmem:[%s3756_s0 + $0x4d8] sm:$0xff]  ;;  %v251_v14 = vld [vmem:[%s3756_s0 + $0x650] sm:$0xff] }
  0x7f   :  { %v678_v42 = vsel %vm305_vm2, %v223_v59, 0.0  ;;  %v728_v5 = vadd.f32 %v727_v18, %v726_v52  ;;  %v3120_v1 = vsel %vm305_vm2, %v174_v41, 0.0  ;;  %v628_v3 = vadd.f32 %v627_v45, %v626_v44  ;;  %v228_v41 = vld [vmem:[%s3756_s0 + $0x598] sm:$0xff]  ;;  %v273_v52 = vld [vmem:[%s3756_s0 + $0x700] sm:$0xff] }
  0x80   :  { %v677_v50 = vadd.f32 %v676_v47, %v675_v61  ;;  %v731_v40 = vsel %vm305_vm2, %v247_v56, 0.0  ;;  %v563_v49 = vadd.f32 %v3035_v60, %v561_v6  ;;  %v629_v58 = vsel %vm305_vm2, %v201_v53, 0.0  ;;  %v252_v56 = vld [vmem:[%s3756_s0 + $0x658] sm:$0xff]  ;;  %v274_v53 = vld [vmem:[%s3756_s0 + $0x708] sm:$0xff] }
  0x81   :  { %v680_v10 = vsel %vm305_vm2, %v224_v54, 0.0  ;;  %v730_v8 = vadd.f32 %v729_v51, %v728_v5  ;;  %v3139_v22 = vadd.f32 %v2732_v23, %v366_v55  ;;  %v431_v24 = vadd.f32 %v2826_v7, %v429_v57  ;;  %v203_v23 = vld [vmem:[%s3756_s0 + $0x4d0] sm:$0xff]  ;;  %v229_v51 = vld [vmem:[%s3756_s0 + $0x5a0] sm:$0xff] }
  0x82   :  { %v679_v25 = vadd.f32 %v678_v42, %v677_v50  ;;  %v733_v60 = vsel %vm305_vm2, %v248_v62, 0.0  ;;  %v496_v28 = vadd.f32 %v2937_v43, %v494_v63  ;;  %v3148_v29 = vsel %vm305_vm2, %v175_v17, 0.0  ;;  %v227_v7 = vld [vmem:[%s3756_s0 + $0x590] sm:$0xff]  ;;  %v253_v17 = vld [vmem:[%s3756_s0 + $0x660] sm:$0xff] }
  0x83   :  { %v682_v32 = vsel %vm305_vm2, %v225_v20, 0.0  ;;  %v732_v33 = vadd.f32 %v731_v40, %v730_v8  ;;  %v3158_v34 = vsel %vm305_vm2, %v176_v13, 0.0  ;;  %v630_v30 = vadd.f32 %v629_v58, %v628_v3  ;;  %v275_v54 = vld [vmem:[%s3756_s0 + $0x710] sm:$0xff]  ;;  %v230_v13 = vld [vmem:[%s3756_s0 + $0x5a8] sm:$0xff] }
  0x84   :  { %v681_v37 = vadd.f32 %v680_v10, %v679_v25  ;;  %v735_v43 = vsel %vm305_vm2, %v249_v9, 0.0  ;;  %v565_v59 = vadd.f32 %v564_v36, %v563_v49  ;;  %v631_v44 = vsel %vm305_vm2, %v202_v16, 0.0  ;;  %v254_v8 = vld [vmem:[%s3756_s0 + $0x668] sm:$0xff]  ;;  %v277_v16 = vld [vmem:[%s3756_s0 + $0x720] sm:$0xff] }
  0x85   :  { %v684_v31 = vsel %vm305_vm2, %v226_v21, 0.0  ;;  %v734_v18 = vadd.f32 %v733_v60, %v732_v33  ;;  %v369_v6 = vrot.slane %v3139_v22, 4  ;;  %v3177_v45 = vadd.f32 %v2835_v27, %v431_v24 }
  0x86   :  { %v683_v47 = vadd.f32 %v682_v32, %v681_v37  ;;  %v737_v36 = vsel %vm305_vm2, %v250_v26, 0.0  ;;  %v498_v55 = vadd.f32 %v2950_v46, %v496_v28  ;;  %v633_v27 = vsel %vm305_vm2, %v203_v23, 0.0  ;;  %v276_v46 = vld [vmem:[%s3756_s0 + $0x718] sm:$0xff]  ;;  %v231_v26 = vld [vmem:[%s3756_s0 + $0x5b0] sm:$0xff] }
  0x87   :  { %v686_v57 = vsel %vm305_vm2, %v227_v7, 0.0  ;;  %v736_v61 = vadd.f32 %v735_v43, %v734_v18  ;;  %v632_v62 = vadd.f32 %v631_v44, %v630_v30  ;;  %v635_v63 = vsel %vm305_vm2, %v204_v38, 0.0  ;;  %v255_v7 = vld [vmem:[%s3756_s0 + $0x670] sm:$0xff] }
  0x88   :  { %v685_v42 = vadd.f32 %v684_v31, %v683_v47  ;;  %v739_v5 = vsel %vm305_vm2, %v251_v14, 0.0  ;;  %v567_v20 = vadd.f32 %v3085_v48, %v565_v59  ;;  %v688_v3 = vsel %vm305_vm2, %v228_v41, 0.0  ;;  %v205_v48 = vld [vmem:[%s3756_s0 + $0x4e0] sm:$0xff]  ;;  %v232_v14 = vld [vmem:[%s3756_s0 + $0x5b8] sm:$0xff] }
  0x89   :  { %v738_v50 = vadd.f32 %v737_v36, %v736_v61  ;;  %v741_v40 = vsel %vm305_vm2, %v252_v56, 0.0  ;;  %v789_v49 = vsel %vm305_vm2, %v273_v52, 0.0  ;;  %v790_v58 = vsel %vm305_vm2, %v274_v53, 0.0  ;;  %v256_v41 = vld [vmem:[%s3756_s0 + $0x678] sm:$0xff]  ;;  %v206_v53 = vld [vmem:[%s3756_s0 + $0x4e8] sm:$0xff] }
  0x8a   :  { %v687_v9 = vadd.f32 %v686_v57, %v685_v42  ;;  %v792_v10 = vsel %vm305_vm2, %v275_v54, 0.0  ;;  %v500_v21 = vadd.f32 %v2974_v11, %v498_v55  ;;  %v690_v24 = vsel %vm305_vm2, %v229_v51, 0.0  ;;  %v278_v11 = vld [vmem:[%s3756_s0 + $0x728] sm:$0xff]  ;;  %v233_v54 = vld [vmem:[%s3756_s0 + $0x5c0] sm:$0xff]  ;;  %v280_v51 = vld [vmem:[%s3756_s0 + $0x738] sm:$0xff] }
  0x8b   :  { %v740_v25 = vadd.f32 %v739_v5, %v738_v50  ;;  %v791_v60 = vadd.f32 %v790_v58, %v789_v49  ;;  %v634_v28 = vadd.f32 %v633_v27, %v632_v62  ;;  %v743_v33 = vsel %vm305_vm2, %v253_v17, 0.0  ;;  %v258_v50 = vld [vmem:[%s3756_s0 + $0x688] sm:$0xff] }
  0x8c   :  { %v689_v32 = vadd.f32 %v688_v3, %v687_v9  ;;  %v794_v23 = vsel %vm305_vm2, %v276_v46, 0.0  ;;  %v569_v30 = vadd.f32 %v3110_v2, %v567_v20  ;;  %v692_v37 = vsel %vm305_vm2, %v230_v13, 0.0  ;;  %v279_v2 = vld [vmem:[%s3756_s0 + $0x730] sm:$0xff] }
  0x8d   :  { %v742_v43 = vadd.f32 %v741_v40, %v740_v25  ;;  %v793_v38 = vadd.f32 %v792_v10, %v791_v60  ;;  %v637_v59 = vsel %vm305_vm2, %v205_v48, 0.0  ;;  %v745_v31 = vsel %vm305_vm2, %v254_v8, 0.0  ;;  %v207_v8 = vld [vmem:[%s3756_s0 + $0x4f0] sm:$0xff] }
  0x8e   :  { %v691_v44 = vadd.f32 %v690_v24, %v689_v32  ;;  %v796_v18 = vsel %vm305_vm2, %v277_v16, 0.0  ;;  %v502_v56 = vadd.f32 %v2977_v15, %v500_v21  ;;  %v694_v47 = vsel %vm305_vm2, %v231_v26, 0.0  ;;  %v257_v15 = vld [vmem:[%s3756_s0 + $0x680] sm:$0xff]  ;;  %v259_v16 = vld [vmem:[%s3756_s0 + $0x690] sm:$0xff]  ;;  %v282_v21 = vld [vmem:[%s3756_s0 + $0x748] sm:$0xff] }
  0x8f   :  { %v744_v36 = vadd.f32 %v743_v33, %v742_v43  ;;  %v795_v52 = vadd.f32 %v794_v23, %v793_v38  ;;  %v636_v55 = vadd.f32 %v635_v63, %v634_v28  ;;  %v747_v57 = vsel %vm305_vm2, %v255_v7, 0.0  ;;  %v260_v28 = vld [vmem:[%s3756_s0 + $0x698] sm:$0xff]  ;;  %v235_v43 = vld [vmem:[%s3756_s0 + $0x5d0] sm:$0xff] }
  0x90   :  { %v693_v27 = vadd.f32 %v692_v37, %v691_v44  ;;  %v798_v61 = vsel %vm305_vm2, %v278_v11, 0.0  ;;  %v571_v62 = vadd.f32 %v3120_v1, %v569_v30  ;;  %v696_v42 = vsel %vm305_vm2, %v232_v14, 0.0  ;;  %v281_v1 = vld [vmem:[%s3756_s0 + $0x740] sm:$0xff] }
  0x91   :  { %v746_v5 = vadd.f32 %v745_v31, %v744_v36  ;;  %v797_v17 = vadd.f32 %v796_v18, %v795_v52  ;;  %v435_v63 = vadd.f32 %v2850_v35, %v3177_v45  ;;  %v749_v20 = vsel %vm305_vm2, %v256_v41, 0.0  ;;  %v234_v35 = vld [vmem:[%s3756_s0 + $0x5c8] sm:$0xff]  ;;  %v284_v31 = vld [vmem:[%s3756_s0 + $0x758] sm:$0xff] }
  0x92   :  { %v695_v46 = vadd.f32 %v694_v47, %v693_v27  ;;  %v800_v3 = vsel %vm305_vm2, %v279_v2, 0.0  ;;  %v639_v40 = vsel %vm305_vm2, %v206_v53, 0.0  ;;  %v698_v13 = vsel %vm305_vm2, %v233_v54, 0.0  ;;  %v1556_v47 = vld [vmem:[%s3757_s10 + $0x10] sm:$0xff]  ;;  %v1557_v36 = vld [vmem:[%s3757_s10 + $0x18] sm:$0xff]  ;;  %v285_v27 = vld [vmem:[%s3756_s0 + $0x760] sm:$0xff] }
  0x93   :  { %v748_v9 = vadd.f32 %v747_v57, %v746_v5  ;;  %v799_v49 = vadd.f32 %v798_v61, %v797_v17  ;;  %v638_v45 = vadd.f32 %v637_v59, %v636_v55  ;;  %v751_v10 = vsel %vm305_vm2, %v257_v15, 0.0  ;;  %v208_v52 = vld [vmem:[%s3756_s0 + $0x4f8] sm:$0xff]  ;;  %v262_v55 = vld [vmem:[%s3756_s0 + $0x6a8] sm:$0xff] }
  0x94   :  { %v697_v58 = vadd.f32 %v696_v42, %v695_v46  ;;  %v802_v48 = vsel %vm305_vm2, %v280_v51, 0.0  ;;  %v504_v24 = vadd.f32 %v2990_v19, %v502_v56  ;;  %v573_v25 = vadd.f32 %v3148_v29, %v571_v62  ;;  %v283_v19 = vld [vmem:[%s3756_s0 + $0x750] sm:$0xff]  ;;  %v236_v62 = vld [vmem:[%s3756_s0 + $0x5d8] sm:$0xff] }
  0x95   :  { %v750_v60 = vadd.f32 %v749_v20, %v748_v9  ;;  %v801_v26 = vadd.f32 %v800_v3, %v799_v49  ;;  %v3300_v32 = vadd.f32 %v369_v6, %v3139_v22  ;;  %v753_v23 = vsel %vm305_vm2, %v258_v50, 0.0  ;;  %v1554_v22 = vld [vmem:[%s3757_s10] sm:$0xff]  ;;  %v1555_v6 = vld [vmem:[%s3757_s10 + $0x8] sm:$0xff]  ;;  %v263_v42 = vld [vmem:[%s3756_s0 + $0x6b0] sm:$0xff] }
  0x96   :  { %v699_v33 = vadd.f32 %v698_v13, %v697_v58  ;;  %v804_v7 = vsel %vm305_vm2, %v281_v1, 0.0  ;;  %v437_v29 = vadd.f32 %v2856_v39, %v435_v63  ;;  %v700_v11 = vsel %vm305_vm2, %v234_v35, 0.0  ;;  %v261_v39 = vld [vmem:[%s3756_s0 + $0x6a0] sm:$0xff]  ;;  %v286_v20 = vld [vmem:[%s3756_s0 + $0x768] sm:$0xff] }
  0x97   :  { %v752_v30 = vadd.f32 %v751_v10, %v750_v60  ;;  %v803_v37 = vadd.f32 %v802_v48, %v801_v26  ;;  %v640_v38 = vadd.f32 %v639_v40, %v638_v45  ;;  %v641_v14 = vsel %vm305_vm2, %v207_v8, 0.0  ;;  %v1558_v13 = vld [vmem:[%s3757_s10 + $0x20] sm:$0xff]  ;;  %v1559_v9 = vld [vmem:[%s3757_s10 + $0x28] sm:$0xff]  ;;  %v264_v10 = vld [vmem:[%s3756_s0 + $0x6b8] sm:$0xff] }
  0x98   :  { %v755_v59 = vsel %vm305_vm2, %v259_v16, 0.0  ;;  %v806_v44 = vsel %vm305_vm2, %v282_v21, 0.0  ;;  %v506_v18 = vadd.f32 %v3015_v12, %v504_v24  ;;  %v575_v41 = vadd.f32 %v3158_v34, %v573_v25  ;;  %v287_v48 = vld [vmem:[%s3756_s0 + $0x770] sm:$0xff]  ;;  %v237_v25 = vld [vmem:[%s3756_s0 + $0x5e0] sm:$0xff] }
  0x99   :  { %v754_v2 = vadd.f32 %v753_v23, %v752_v30  ;;  %v805_v56 = vadd.f32 %v804_v7, %v803_v37  ;;  %v701_v53 = vadd.f32 %v700_v11, %v699_v33  ;;  %v757_v54 = vsel %vm305_vm2, %v260_v28, 0.0  ;;  %v265_v60 = vld [vmem:[%s3756_s0 + $0x6c0] sm:$0xff]  ;;  %v288_v7 = vld [vmem:[%s3756_s0 + $0x778] sm:$0xff]  ;;  %v1560_v37 = vld [vmem:[%s3757_s10 + $0x30] sm:$0xff] }
  0x9a   :  { %v808_v12 = vsel %vm305_vm2, %v283_v19, 0.0  ;;  %v1903_v34 = vpack.c.bf16 %v1555_v6, %v1554_v22  ;;  %v438_v57 = vrot.slane %v437_v29, 4  ;;  %v702_v61 = vsel %vm305_vm2, %v235_v43, 0.0  ;;  %v1561_v22 = vld [vmem:[%s3757_s10 + $0x38] sm:$0xff] }
  0x9b   :  { %v756_v15 = vadd.f32 %v755_v59, %v754_v2  ;;  %v807_v51 = vadd.f32 %v806_v44, %v805_v56  ;;  %v642_v5 = vadd.f32 %v641_v14, %v640_v38  ;;  %v759_v17 = vsel %vm305_vm2, %v261_v39, 0.0  ;;  %v266_v14 = vld [vmem:[%s3756_s0 + $0x6c8] sm:$0xff]  ;;  %v289_v59 = vld [vmem:[%s3756_s0 + $0x780] sm:$0xff]  ;;  %v267_v56 = vld [vmem:[%s3756_s0 + $0x6d0] sm:$0xff] }
  0x9c   :  { %v810_v63 = vsel %vm305_vm2, %v284_v31, 0.0  ;;  %1904 = vmatpush3.bf16.msra.mxu1 %v1903_v34  ;;  %v1906_v46 = vpack.c.bf16 %v1557_v36, %v1556_v47  ;;  %v507_v3 = vrot.slane %v506_v18, 4  ;;  %v643_v50 = vsel %vm305_vm2, %v208_v52, 0.0 }
  0x9d   :  { %v758_v1 = vadd.f32 %v757_v54, %v756_v15  ;;  %v809_v40 = vadd.f32 %v808_v12, %v807_v51  ;;  %1905 = vmatprep.subr.bf16.mxu1 %v1932_v0  ;;  %v576_v49 = vrot.slane %v575_v41, 4  ;;  %v703_v35 = vadd.f32 %v702_v61, %v701_v53  ;;  %v290_v54 = vld [vmem:[%s3756_s0 + $0x788] sm:$0xff] }
  0x9e   :  { %v761_v45 = vsel %vm305_vm2, %v262_v55, 0.0  ;;  %v812_v58 = vsel %vm305_vm2, %v285_v27, 0.0  ;;  %v439_v8 = vadd.f32 %v438_v57, %v437_v29  ;;  %v704_v16 = vsel %vm305_vm2, %v236_v62, 0.0  ;;  %v1562_v57 = vld [vmem:[%s3757_s10 + $0x40] sm:$0xff]  ;;  %v1563_v61 = vld [vmem:[%s3757_s10 + $0x48] sm:$0xff] }
  0x9f   :  { %v760_v21 = vadd.f32 %v759_v17, %v758_v1  ;;  %v811_v24 = vadd.f32 %v810_v63, %v809_v40  ;;  %v644_v26 = vadd.f32 %v643_v50, %v642_v5  ;;  %v763_v28 = vsel %vm305_vm2, %v263_v42, 0.0  ;;  %v291_v5 = vld [vmem:[%s3756_s0 + $0x790] sm:$0xff]  ;;  %v269_v50 = vld [vmem:[%s3756_s0 + $0x6e0] sm:$0xff] }
  0xa0   :  { %v814_v33 = vsel %vm305_vm2, %v286_v20, 0.0  ;;  %1907 = vmatpush3.bf16.msra.mxu1 %v1906_v46  ;;  %v1909_v23 = vpack.c.bf16 %v1559_v9, %v1558_v13  ;;  %v371_v19 = vrot.slane %v3300_v32, 2  ;;  %v508_v29 = vadd.f32 %v507_v3, %v506_v18  ;;  %v239_v3 = vld [vmem:[%s3756_s0 + $0x5f0] sm:$0xff] }
  0xa1   :  { %v762_v11 = vadd.f32 %v761_v45, %v760_v21  ;;  %v813_v30 = vadd.f32 %v812_v58, %v811_v24  ;;  %1908 = vmatprep.subr.bf16.mxu1 %v1932_v0  ;;  %v577_v6 = vadd.f32 %v576_v49, %v575_v41  ;;  %v705_v43 = vadd.f32 %v704_v16, %v703_v35  ;;  %v238_v41 = vld [vmem:[%s3756_s0 + $0x5e8] sm:$0xff]  ;;  %v292_v49 = vld [vmem:[%s3756_s0 + $0x798] sm:$0xff] }
  0xa2   :  { %v765_v39 = vsel %vm305_vm2, %v264_v10, 0.0  ;;  %v816_v38 = vsel %vm305_vm2, %v287_v48, 0.0  ;;  %v440_v44 = vrot.slane %v439_v8, 2  ;;  %v706_v31 = vsel %vm305_vm2, %v237_v25, 0.0  ;;  %v1564_v48 = vld [vmem:[%s3757_s10 + $0x50] sm:$0xff] }
  0xa3   :  { %v764_v18 = vadd.f32 %v763_v28, %v762_v11  ;;  %v815_v2 = vadd.f32 %v814_v33, %v813_v30  ;;  %v645_v47 = vrot.slane %v644_v26, 4  ;;  %v767_v36 = vsel %vm305_vm2, %v265_v60, 0.0  ;;  %v270_v60 = vld [vmem:[%s3756_s0 + $0x6e8] sm:$0xff] }
  0xa4   :  { %v818_v52 = vsel %vm305_vm2, %v288_v7, 0.0  ;;  %1910 = vmatpush3.bf16.msra.mxu1 %v1909_v23  ;;  %v1912_v53 = vpack.c.bf16 %v1561_v22, %v1560_v37  ;;  %v372_v12 = vadd.f32 %v371_v19, %v3300_v32  ;;  %v509_v34 = vrot.slane %v508_v29, 2  ;;  %v268_v32 = vld [vmem:[%s3756_s0 + $0x6d8] sm:$0xff] }
  0xa5   :  { %v766_v55 = vadd.f32 %v765_v39, %v764_v18  ;;  %v817_v27 = vadd.f32 %v816_v38, %v815_v2  ;;  %1911 = vmatprep.subr.bf16.mxu1 %v1932_v0  ;;  %v578_v15 = vrot.slane %v577_v6, 2  ;;  %v707_v51 = vadd.f32 %v706_v31, %v705_v43  ;;  %v240_v19 = vld [vmem:[%s3756_s0 + $0x5f8] sm:$0xff] }
  0xa6   :  { %v769_v62 = vsel %vm305_vm2, %v266_v14, 0.0  ;;  %v820_v42 = vsel %vm305_vm2, %v289_v59, 0.0  ;;  %v441_v17 = vadd.f32 %v440_v44, %v439_v8  ;;  %v708_v63 = vsel %vm305_vm2, %v238_v41, 0.0  ;;  %v1565_v8 = vld [vmem:[%s3757_s10 + $0x58] sm:$0xff]  ;;  %v1566_v59 = vld [vmem:[%s3757_s10 + $0x60] sm:$0xff]  ;;  %v1567_v44 = vld [vmem:[%s3757_s10 + $0x68] sm:$0xff] }
  0xa7   :  { %v768_v46 = vadd.f32 %v767_v36, %v766_v55  ;;  %v819_v20 = vadd.f32 %v818_v52, %v817_v27  ;;  %v646_v1 = vadd.f32 %v645_v47, %v644_v26  ;;  %v771_v40 = vsel %vm305_vm2, %v267_v56, 0.0  ;;  %v293_v26 = vld [vmem:[%s3756_s0 + $0x7a0] sm:$0xff]  ;;  %v1483_v47 = vld [vmem:[%s3758_s3 + $0x8] sm:$0xff]  ;;  %v272_v36 = vld [vmem:[%s3756_s0 + $0x6f8] sm:$0xff] }
  0xa8   :  { %v822_v13 = vsel %vm305_vm2, %v290_v54, 0.0  ;;  %1913 = vmatpush3.bf16.msra.mxu1 %v1912_v53  ;;  %v1915_v9 = vpack.c.bf16 %v1563_v61, %v1562_v57  ;;  %v373_v35 = vrot.slane %v372_v12, 1  ;;  %v510_v45 = vadd.f32 %v509_v34, %v508_v29  ;;  %v271_v29 = vld [vmem:[%s3756_s0 + $0x6f0] sm:$0xff]  ;;  %v1482_v56 = vld [vmem:[%s3758_s3] sm:$0xff]  ;;  %v296_v55 = vld [vmem:[%s3756_s0 + $0x7b8] sm:$0xff] }
  0xa9   :  { %v770_v58 = vadd.f32 %v769_v62, %v768_v46  ;;  %v821_v10 = vadd.f32 %v820_v42, %v819_v20  ;;  %1914 = vmatprep.subr.bf16.mxu1 %v1932_v0  ;;  %v579_v16 = vadd.f32 %v578_v15, %v577_v6  ;;  %v709_v21 = vadd.f32 %v708_v63, %v707_v51  ;;  %v294_v6 = vld [vmem:[%s3756_s0 + $0x7a8] sm:$0xff]  ;;  %v295_v52 = vld [vmem:[%s3756_s0 + $0x7b0] sm:$0xff]  ;;  %v297_v51 = vld [vmem:[%s3756_s0 + $0x7c0] sm:$0xff] }
  0xaa   :  { %v773_v24 = vsel %vm305_vm2, %v268_v32, 0.0  ;;  %v824_v25 = vsel %vm305_vm2, %v291_v5, 0.0  ;;  %v442_v28 = vrot.slane %v441_v17, 1  ;;  %v710_v33 = vsel %vm305_vm2, %v239_v3, 0.0  ;;  %v1568_v5 = vld [vmem:[%s3757_s10 + $0x70] sm:$0xff]  ;;  %v298_v46 = vld [vmem:[%s3756_s0 + $0x7c8] sm:$0xff] }
  0xab   :  { %v772_v23 = vadd.f32 %v771_v40, %v770_v58  ;;  %v823_v7 = vadd.f32 %v822_v13, %v821_v10  ;;  %v647_v11 = vrot.slane %v646_v1, 2  ;;  %v775_v30 = vsel %vm305_vm2, %v269_v50, 0.0  ;;  %v299_v40 = vld [vmem:[%s3756_s0 + $0x7d0] sm:$0xff] }
  0xac   :  { %v826_v37 = vsel %vm305_vm2, %v292_v49, 0.0  ;;  %1916 = vmatpush3.bf16.msra.mxu1 %v1915_v9  ;;  %v1918_v22 = vpack.c.bf16 %v1565_v8, %v1564_v48  ;;  %v374_v43 = vadd.f32 %v373_v35, %v372_v12  ;;  %v511_v39 = vrot.slane %v510_v45, 1  ;;  %v1484_v35 = vld [vmem:[%s3758_s3 + $0x10] sm:$0xff] }
  0xad   :  { %v774_v38 = vadd.f32 %v773_v24, %v772_v23  ;;  %v825_v14 = vadd.f32 %v824_v25, %v823_v7  ;;  %1917 = vmatprep.subr.bf16.mxu1 %v1932_v0  ;;  %v580_v31 = vrot.slane %v579_v16, 1  ;;  %v711_v18 = vadd.f32 %v710_v33, %v709_v21  ;;  %v1486_v21 = vld [vmem:[%s3758_s3 + $0x20] sm:$0xff]  ;;  %v1487_v24 = vld [vmem:[%s3758_s3 + $0x28] sm:$0xff]  ;;  %v300_v25 = vld [vmem:[%s3756_s0 + $0x7d8] sm:$0xff] }
  0xae   :  { %v777_v2 = vsel %vm305_vm2, %v270_v60, 0.0  ;;  %v828_v41 = vsel %vm305_vm2, %v293_v26, 0.0  ;;  %v443_v53 = vadd.f32 %v442_v28, %v441_v17  ;;  %v712_v54 = vsel %vm305_vm2, %v240_v19, 0.0  ;;  %v1569_v17 = vld [vmem:[%s3757_s10 + $0x78] sm:$0xff]  ;;  %v301_v60 = vld [vmem:[%s3756_s0 + $0x7e0] sm:$0xff] }
  0xaf   :  { %v776_v12 = vadd.f32 %v775_v30, %v774_v38  ;;  %v827_v34 = vadd.f32 %v826_v37, %v825_v14  ;;  %v648_v27 = vadd.f32 %v647_v11, %v646_v1  ;;  %v779_v57 = vsel %vm305_vm2, %v271_v29, 0.0  ;;  %v302_v30 = vld [vmem:[%s3756_s0 + $0x7e8] sm:$0xff]  ;;  %v303_v37 = vld [vmem:[%s3756_s0 + $0x7f0] sm:$0xff] }
  0xb0   :  { %v830_v61 = vsel %vm305_vm2, %v294_v6, 0.0  ;;  %1919 = vmatpush3.bf16.msra.mxu1 %v1918_v22  ;;  %v1921_v15 = vpack.c.bf16 %v1567_v44, %v1566_v59  ;;  %v512_v62 = vadd.f32 %v511_v39, %v510_v45  ;;  %v1498_v63 = vadd.f32 %v1483_v47, %v1482_v56  ;;  %v1485_v45 = vld [vmem:[%s3758_s3 + $0x18] sm:$0xff] }
  0xb1   :  { %v778_v42 = vadd.f32 %v777_v2, %v776_v12  ;;  %v829_v32 = vadd.f32 %v828_v41, %v827_v34  ;;  %1920 = vmatprep.subr.bf16.mxu1 %v1932_v0  ;;  %v581_v20 = vadd.f32 %v580_v31, %v579_v16  ;;  %v713_v3 = vadd.f32 %v712_v54, %v711_v18  ;;  %v304_v22 = vld [vmem:[%s3756_s0 + $0x7f8] sm:$0xff]  ;;  %v1300_v31 = vld [vmem:[%s3759_s2] sm:$0xff]  ;;  %v1301_v18 = vld [vmem:[%s3759_s2 + $0x8] sm:$0xff] }
  0xb2   :  { %v781_v50 = vsel %vm305_vm2, %v272_v36, 0.0  ;;  %v832_v1 = vsel %vm305_vm2, %v295_v52, 0.0  ;;  %v878_v49 = vsel %vm877_vm3, %v443_v53, %v374_v43  ;;  %v1499_v58 = vrot.slane %v1498_v63, 4  ;;  %v1302_v2 = vld [vmem:[%s3759_s2 + $0x10] sm:$0xff]  ;;  %v1303_v36 = vld [vmem:[%s3759_s2 + $0x18] sm:$0xff]  ;;  %v1304_v52 = vld [vmem:[%s3759_s2 + $0x20] sm:$0xff] }
  0xb3   :  { %v780_v13 = vadd.f32 %v779_v57, %v778_v42  ;;  %v831_v9 = vadd.f32 %v830_v61, %v829_v32  ;;  %v649_v10 = vrot.slane %v648_v27, 1  ;;  %v834_v48 = vsel %vm305_vm2, %v296_v55, 0.0  ;;  %v1305_v53 = vld [vmem:[%s3759_s2 + $0x28] sm:$0xff]  ;;  %v1306_v57 = vld [vmem:[%s3759_s2 + $0x30] sm:$0xff]  ;;  %v1307_v61 = vld [vmem:[%s3759_s2 + $0x38] sm:$0xff] }
  0xb4   :  { %v836_v8 = vsel %vm305_vm2, %v297_v51, 0.0  ;;  %1922 = vmatpush3.bf16.msra.mxu1 %v1921_v15  ;;  %v1924_v16 = vpack.c.bf16 %v1569_v17, %v1568_v5  ;;  %v838_v33 = vsel %vm305_vm2, %v298_v46, 0.0  ;;  %v1500_v23 = vadd.f32 %v1499_v58, %v1498_v63  ;;  %v1488_v15 = vld [vmem:[%s3758_s3 + $0x30] sm:$0xff]  ;;  %v1489_v5 = vld [vmem:[%s3758_s3 + $0x38] sm:$0xff]  ;;  %v1490_v17 = vld [vmem:[%s3758_s3 + $0x40] sm:$0xff] }
  0xb5   :  { %v782_v26 = vadd.f32 %v781_v50, %v780_v13  ;;  %v833_v28 = vadd.f32 %v832_v1, %v831_v9  ;;  %1923 = vmatprep.subr.bf16.mxu1 %v1932_v0  ;;  %v714_v7 = vrot.slane %v713_v3, 4  ;;  %v840_v19 = vsel %vm305_vm2, %v299_v40, 0.0  ;;  %v1491_v63 = vld [vmem:[%s3758_s3 + $0x48] sm:$0xff]  ;;  %v1493_v58 = vld [vmem:[%s3758_s3 + $0x58] sm:$0xff] }
  0xb6   :  { %v880_v29 = vsel %vm879_vm4, %v512_v62, %v878_v49  ;;  %v1505_v11 = vadd.f32 %v1485_v45, %v1484_v35  ;;  %v1501_v39 = vrot.slane %v1500_v23, 2  ;;  %v1512_v38 = vadd.f32 %v1487_v24, %v1486_v21  ;;  %v1492_v45 = vld [vmem:[%s3758_s3 + $0x50] sm:$0xff] }
  0xb7   :  { %v783_v6 = vrot.slane %v782_v26, 4  ;;  %v835_v43 = vadd.f32 %v834_v48, %v833_v28  ;;  %v650_v14 = vadd.f32 %v649_v10, %v648_v27  ;;  %v842_v59 = vsel %vm305_vm2, %v300_v25, 0.0  ;;  %v1494_v25 = vld [vmem:[%s3758_s3 + $0x60] sm:$0xff] }
  0xb8   :  { %v844_v44 = vsel %vm305_vm2, %v301_v60, 0.0  ;;  %1925 = vmatpush3.bf16.msra.mxu1 %v1924_v16  ;;  %v1506_v41 = vrot.slane %v1505_v11, 4  ;;  %v882_v47 = vsel %vm881_vm5, %v581_v20, %v880_v29  ;;  %v1502_v54 = vadd.f32 %v1501_v39, %v1500_v23  ;;  %v1495_v60 = vld [vmem:[%s3758_s3 + $0x68] sm:$0xff]  ;;  %v1496_v29 = vld [vmem:[%s3758_s3 + $0x70] sm:$0xff] }
  0xb9   :  { %v837_v56 = vadd.f32 %v836_v8, %v835_v43  ;;  %v1513_v12 = vrot.slane %v1512_v38, 4  ;;  %v846_v34 = vsel %vm305_vm2, %v302_v30, 0.0  ;;  %v848_v55 = vsel %vm305_vm2, %v303_v37, 0.0 }
  0xba   :  { %v3572_v27 = vsel %vm305_vm2, %v304_v22, 0.0  ;;  %v1507_v51 = vadd.f32 %v1506_v41, %v1505_v11  ;;  %v715_v62 = vadd.f32 %v714_v7, %v713_v3  ;;  %v784_v42 = vadd.f32 %v783_v6, %v782_v26  ;;  %v1497_v11 = vld [vmem:[%s3758_s3 + $0x78] sm:$0xff] }
  0xbb   :  { %v839_v32 = vadd.f32 %v838_v33, %v837_v56  ;;  %v1514_v46 = vadd.f32 %v1513_v12, %v1512_v38  ;;  %v3593_v20 = vsel %vm883_vm6, %v650_v14, %v882_v47  ;;  %v3595_v50 = vadd.f32 %v1301_v18, %v1300_v31 }
  0xbc   :  { %v3597_v3 = vadd.f32 %v1303_v36, %v1302_v2  ;;  %v1508_v1 = vrot.slane %v1507_v51, 2  ;;  %v3599_v13 = vadd.f32 %v1305_v53, %v1304_v52  ;;  %v1503_v9 = vrot.slane %v1502_v54, 1 }
  0xbd   :  { %v841_v40 = vadd.f32 %v840_v19, %v839_v32  ;;  %v1515_v49 = vrot.slane %v1514_v46, 2  ;;  %v3601_v35 = vadd.f32 %v1307_v61, %v1306_v57  ;;  %v1519_v48 = vadd.f32 %v1489_v5, %v1488_v15 }
  0xbe   :  { %v1509_v10 = vadd.f32 %v1508_v1, %v1507_v51  ;;  %v1526_v8 = vadd.f32 %v1491_v63, %v1490_v17  ;;  %v716_v16 = vrot.slane %v715_v62, 2  ;;  %v785_v21 = vrot.slane %v784_v42, 2 }
  0xbf   :  { %v843_v24 = vadd.f32 %v842_v59, %v841_v40  ;;  %v1516_v26 = vadd.f32 %v1515_v49, %v1514_v46  ;;  %v1317_v28 = vrot.slane %v3595_v50, 4  ;;  %v1520_v23 = vrot.slane %v1519_v48, 4 }
  0xc0   :  { %v1510_v33 = vrot.slane %v1509_v10, 1  ;;  %v1527_v7 = vrot.slane %v1526_v8, 4  ;;  %v1504_v30 = vadd.f32 %v1503_v9, %v1502_v54  ;;  %v1533_v22 = vadd.f32 %v1493_v58, %v1492_v45 }
  0xc1   :  { %v845_v19 = vadd.f32 %v844_v44, %v843_v24  ;;  %v1517_v37 = vrot.slane %v1516_v26, 1  ;;  %v1521_v43 = vadd.f32 %v1520_v23, %v1519_v48  ;;  %v1540_v38 = vadd.f32 %v1495_v60, %v1494_v25  ;;  %v1309_v48 = vld [vmem:[%s3759_s2 + $0x48] sm:$0xff] }
  0xc2   :  { %v1511_v6 = vadd.f32 %v1510_v33, %v1509_v10  ;;  %v1528_v39 = vadd.f32 %v1527_v7, %v1526_v8  ;;  %v717_v14 = vadd.f32 %v716_v16, %v715_v62  ;;  %v786_v59 = vadd.f32 %v785_v21, %v784_v42 }
  0xc3   :  { %v847_v31 = vadd.f32 %v846_v34, %v845_v19  ;;  %v1534_v18 = vrot.slane %v1533_v22, 4  ;;  %v1522_v44 = vrot.slane %v1521_v43, 2  ;;  %v1541_v41 = vrot.slane %v1540_v38, 4 }
  0xc4   :  { %v1529_v2 = vrot.slane %v1528_v39, 2  ;;  %v1547_v56 = vadd.f32 %v1497_v11, %v1496_v29  ;;  %v1518_v36 = vadd.f32 %v1517_v37, %v1516_v26  ;;  %v1585_v53 = vsel %vm877_vm3, %v1511_v6, %v1504_v30  ;;  %v1310_v29 = vld [vmem:[%s3759_s2 + $0x50] sm:$0xff]  ;;  %v1311_v11 = vld [vmem:[%s3759_s2 + $0x58] sm:$0xff] }
  0xc5   :  { %v849_v47 = vadd.f32 %v848_v55, %v847_v31  ;;  %v1535_v52 = vadd.f32 %v1534_v18, %v1533_v22  ;;  %v1523_v54 = vadd.f32 %v1522_v44, %v1521_v43  ;;  %v1542_v57 = vadd.f32 %v1541_v41, %v1540_v38  ;;  %v1372_v43 = vld [vmem:[%s3760_s8] sm:$0xff]  ;;  %v1313_v18 = vld [vmem:[%s3759_s2 + $0x68] sm:$0xff] }
  0xc6   :  { %v1530_v12 = vadd.f32 %v1529_v2, %v1528_v39  ;;  %v1548_v61 = vrot.slane %v1547_v56, 4  ;;  %v718_v15 = vrot.slane %v717_v14, 1  ;;  %v1324_v62 = vrot.slane %v3597_v3, 4  ;;  %v1373_v39 = vld [vmem:[%s3760_s8 + $0x8] sm:$0xff] }
  0xc7   :  { %v851_v51 = vadd.f32 %v3572_v27, %v849_v47  ;;  %v1536_v34 = vrot.slane %v1535_v52, 2  ;;  %v1524_v42 = vrot.slane %v1523_v54, 1  ;;  %v1543_v5 = vrot.slane %v1542_v57, 2  ;;  %v1308_v27 = vld [vmem:[%s3759_s2 + $0x40] sm:$0xff] }
  0xc8   :  { %v1531_v32 = vrot.slane %v1530_v12, 1  ;;  %v1549_v17 = vadd.f32 %v1548_v61, %v1547_v56  ;;  %v787_v63 = vrot.slane %v786_v59, 1  ;;  %v1586_v1 = vsel %vm879_vm4, %v1518_v36, %v1585_v53  ;;  %v1374_v53 = vld [vmem:[%s3760_s8 + $0x10] sm:$0xff]  ;;  %v1315_v61 = vld [vmem:[%s3759_s2 + $0x78] sm:$0xff] }
  0xc9   :  { %v852_v55 = vrot.slane %v851_v51, 4  ;;  %v1537_v46 = vadd.f32 %v1536_v34, %v1535_v52  ;;  %v1525_v40 = vadd.f32 %v1524_v42, %v1523_v54  ;;  %v1544_v49 = vadd.f32 %v1543_v5, %v1542_v57  ;;  %v1314_v57 = vld [vmem:[%s3759_s2 + $0x70] sm:$0xff] }
  0xca   :  { %v1532_v9 = vadd.f32 %v1531_v32, %v1530_v12  ;;  %v1550_v45 = vrot.slane %v1549_v17, 2  ;;  %v719_v58 = vadd.f32 %v718_v15, %v717_v14  ;;  %v1331_v8 = vrot.slane %v3599_v13, 4  ;;  %v1375_v12 = vld [vmem:[%s3760_s8 + $0x18] sm:$0xff] }
  0xcb   :  { %v853_v10 = vadd.f32 %v852_v55, %v851_v51  ;;  %v1538_v16 = vrot.slane %v1537_v46, 1  ;;  %v1318_v21 = vadd.f32 %v1317_v28, %v3595_v50  ;;  %v1545_v24 = vrot.slane %v1544_v49, 1  ;;  %v1376_v55 = vld [vmem:[%s3760_s8 + $0x20] sm:$0xff] }
  0xcc   :  { %v1551_v25 = vadd.f32 %v1550_v45, %v1549_v17  ;;  %v1587_v60 = vsel %vm881_vm5, %v1525_v40, %v1586_v1  ;;  %v1325_v33 = vadd.f32 %v1324_v62, %v3597_v3  ;;  %v788_v19 = vadd.f32 %v787_v63, %v786_v59 }
  0xcd   :  { %v854_v26 = vrot.slane %v853_v10, 2  ;;  %v1539_v23 = vadd.f32 %v1538_v16, %v1537_v46  ;;  %v1588_v7 = vsel %vm883_vm6, %v1532_v9, %v1587_v60  ;;  %v1344_v50 = vadd.f32 %v1309_v48, %v1308_v27  ;;  %v1377_v46 = vld [vmem:[%s3760_s8 + $0x28] sm:$0xff]  ;;  %v1378_v48 = vld [vmem:[%s3760_s8 + $0x30] sm:$0xff] }
  0xce   :  { %v1546_v28 = vadd.f32 %v1545_v24, %v1544_v49  ;;  %v1552_v30 = vrot.slane %v1551_v25, 1  ;;  %v886_v22 = vsel %vm885_vm7, %v719_v58, %v3593_v20  ;;  %v1338_v3 = vrot.slane %v3601_v35, 4  ;;  %v1312_v20 = vld [vmem:[%s3759_s2 + $0x60] sm:$0xff] }
  0xcf   :  { %v855_v37 = vadd.f32 %v854_v26, %v853_v10  ;;  %v1589_v6 = vsel %vm885_vm7, %v1539_v23, %v1588_v7  ;;  %v1332_v38 = vadd.f32 %v1331_v8, %v3599_v13  ;;  %v1319_v44 = vrot.slane %v1318_v21, 2  ;;  %v1379_v8 = vld [vmem:[%s3760_s8 + $0x38] sm:$0xff] }
  0xd0   :  { %v1553_v14 = vadd.f32 %v1552_v30, %v1551_v25  ;;  %v1590_v59 = vsel %vm887_vm8, %v1546_v28, %v1589_v6  ;;  %v1326_v2 = vrot.slane %v1325_v33, 2  ;;  %v1351_v41 = vadd.f32 %v1311_v11, %v1310_v29  ;;  %v1381_v29 = vld [vmem:[%s3760_s8 + $0x48] sm:$0xff] }
  0xd1   :  { %v856_v31 = vrot.slane %v855_v37, 1  ;;  %v888_v56 = vsel %vm887_vm8, %v788_v19, %v886_v22  ;;  %v1345_v47 = vrot.slane %v1344_v50, 4  ;;  %v1879_v52 = vpack.c.bf16 %v1373_v39, %v1372_v43  ;;  %v1380_v19 = vld [vmem:[%s3760_s8 + $0x40] sm:$0xff]  ;;  %v1382_v43 = vld [vmem:[%s3760_s8 + $0x50] sm:$0xff]  ;;  %v1383_v39 = vld [vmem:[%s3760_s8 + $0x58] sm:$0xff] }
  0xd2   :  { %v1591_v13 = vsel %vm889_vm9, %v1553_v14, %v1590_v59  ;;  %v1339_v54 = vadd.f32 %v1338_v3, %v3601_v35  ;;  %v1333_v15 = vrot.slane %v1332_v38, 2  ;;  %v1358_v51 = vadd.f32 %v1313_v18, %v1312_v20 }
  0xd3   :  { %v857_v36 = vadd.f32 %v856_v31, %v855_v37  ;;  %1858 = vmatmul.mubr.f32.vlgmr.msra.gmra.mrb[2].mxu1 %v1591_v13  ;;  %v1320_v34 = vadd.f32 %v1319_v44, %v1318_v21  ;;  %v1327_v42 = vadd.f32 %v1326_v2, %v1325_v33  ;;  %v1352_v35 = vrot.slane %v1351_v41, 4  ;;  %v1384_v2 = vld [vmem:[%s3760_s8 + $0x60] sm:$0xff] }
  0xd4   :  { %v1346_v32 = vadd.f32 %v1345_v47, %v1344_v50  ;;  %v1882_v5 = vpack.c.bf16 %v1375_v12, %v1374_v53  ;;  %v1340_v17 = vrot.slane %v1339_v54, 2  ;;  %v1365_v63 = vadd.f32 %v1315_v61, %v1314_v57  ;;  %v1386_v53 = vld [vmem:[%s3760_s8 + $0x70] sm:$0xff] }
  0xd5   :  { %v890_v62 = vsel %vm889_vm9, %v857_v36, %v888_v56  ;;  %v1334_v1 = vadd.f32 %v1333_v15, %v1332_v38  ;;  %v1359_v40 = vrot.slane %v1358_v51, 4  ;;  %v1321_v9 = vrot.slane %v1320_v34, 1 }
  0xd6   :  { %1769 = vmatmul.mubr.msk.f32.vlgmr.msra.gmra.mrb[0].mxu0 %vm305_vm2, %v890_v62  ;;  %v1328_v49 = vrot.slane %v1327_v42, 1  ;;  %v1353_v45 = vadd.f32 %v1352_v35, %v1351_v41  ;;  %v1347_v58 = vrot.slane %v1346_v32, 2  ;;  %v1341_v10 = vadd.f32 %v1340_v17, %v1339_v54  ;;  %v1385_v41 = vld [vmem:[%s3760_s8 + $0x68] sm:$0xff]  ;;  %v1387_v54 = vld [vmem:[%s3760_s8 + $0x78] sm:$0xff]  ;;  %s1935_s8 = smov 32  }
  0xd7   :  { %1880 = vmatpush3.bf16.msra.mxu0 %v1879_v52  ;;  %1822 = vmatprep.mubr.msk.f32.mxu0 %vm1933_vm0, %v1934_v4  ;;  %v1885_v4 = vpack.c.bf16 %v1377_v46, %v1376_v55  ;;  %v1366_v27 = vrot.slane %v1365_v63, 4  ;;  %v1335_v16 = vrot.slane %v1334_v1, 1  ;;  %v1360_v21 = vadd.f32 %v1359_v40, %v1358_v51 }
  0xd8   :  { %1881 = vmatprep.subr.bf16.mxu0 %v1932_v0  ;;  %v1322_v24 = vadd.f32 %v1321_v9, %v1320_v34  ;;  %v1329_v25 = vadd.f32 %v1328_v49, %v1327_v42  ;;  %v1354_v60 = vrot.slane %v1353_v45, 2  ;;  %v1348_v26 = vadd.f32 %v1347_v58, %v1346_v32  ;;  %v1706_v34 = vld [vmem:[%s3761_s7] ss:$0 sm:$0xff] }
  0xd9   :  { %v1888_v33 = vpack.c.bf16 %v1379_v8, %v1378_v48  ;;  %v1342_v23 = vrot.slane %v1341_v10, 1  ;;  %v1367_v7 = vadd.f32 %v1366_v27, %v1365_v63  ;;  %v1336_v11 = vadd.f32 %v1335_v16, %v1334_v1  ;;  %v1708_v49 = vld [vmem:[%s3763_s9] ss:$0 sm:$0xff] }
  0xda   :  { %v1361_v50 = vrot.slane %v1360_v21, 2  ;;  %v1355_v28 = vadd.f32 %v1354_v60, %v1353_v45  ;;  %v1403_v30 = vsel %vm877_vm3, %v1329_v25, %v1322_v24  ;;  %v1349_v37 = vrot.slane %v1348_v26, 1  ;;  %v1704_v27 = vld [vmem:[%s3765_s5] ss:$0 sm:$0xff] }
  0xdb   :  { %1883 = vmatpush3.bf16.msra.mxu0 %v1882_v5  ;;  %v1891_v22 = vpack.c.bf16 %v1381_v29, %v1380_v19  ;;  %v1343_v3 = vadd.f32 %v1342_v23, %v1341_v10  ;;  %v1368_v6 = vrot.slane %v1367_v7, 2  ;;  %v1404_v14 = vsel %vm879_vm4, %v1336_v11, %v1403_v30  ;;  %v1710_v60 = vld [vmem:[%s3766_s12] ss:$0 sm:$0xff] }
  0xdc   :  { %1884 = vmatprep.subr.bf16.mxu0 %v1932_v0  ;;  %v1362_v38 = vadd.f32 %v1361_v50, %v1360_v21  ;;  %v1356_v59 = vrot.slane %v1355_v28, 1  ;;  %v1350_v31 = vadd.f32 %v1349_v37, %v1348_v26  ;;  %v1894_v20 = vpack.c.bf16 %v1383_v39, %v1382_v43 }
  0xdd   :  { %v1369_v18 = vadd.f32 %v1368_v6, %v1367_v7  ;;  %v1405_v44 = vsel %vm881_vm5, %v1343_v3, %v1404_v14  ;;  %v1897_v36 = vpack.c.bf16 %v1385_v41, %v1384_v2  ;;  %v1900_v61 = vpack.c.bf16 %v1387_v54, %v1386_v53 }
  0xde   :  { %v1363_v56 = vrot.slane %v1362_v38, 1  ;;  %v1357_v47 = vadd.f32 %v1356_v59, %v1355_v28  ;;  %v1406_v13 = vsel %vm883_vm6, %v1350_v31, %v1405_v44  ;;  %v19_v9 = vstv %s3764_s13 }
  0xdf   :  { %1886 = vmatpush3.bf16.msra.mxu0 %v1885_v4  ;;  %v1370_v52 = vrot.slane %v1369_v18, 1  ;;  %20 = vst [vmem:[#allocation2] sm:$0x1] %v19_v9 }
  0xe0   :  { %1887 = vmatprep.subr.bf16.mxu0 %v1932_v0  ;;  %v1364_v12 = vadd.f32 %v1363_v56, %v1362_v38  ;;  %v1407_v57 = vsel %vm885_vm7, %v1357_v47, %v1406_v13 }
  0xe1   :  { %v1371_v15 = vadd.f32 %v1370_v52, %v1369_v18 }
  0xe2   :  { %v1408_v51 = vsel %vm887_vm8, %v1364_v12, %v1407_v57 }
  0xe3   :  { %1889 = vmatpush3.bf16.msra.mxu0 %v1888_v33  ;;  %v1409_v62 = vsel %vm889_vm9, %v1371_v15, %v1408_v51 }
  0xe4   :  { %1890 = vmatprep.subr.bf16.mxu0 %v1932_v0 }
  0xe6   :  { %v1711_v7 = vld [vmem:[#allocation2] ss:$0 sm:$0xff] }
  0xe7   :  { %1892 = vmatpush3.bf16.msra.mxu0 %v1891_v22 }
  0xe8   :  { %1893 = vmatprep.subr.bf16.mxu0 %v1932_v0 }
  0xeb   :  { %1895 = vmatpush3.bf16.msra.mxu0 %v1894_v20 }
  0xec   :  { %1896 = vmatprep.subr.bf16.mxu0 %v1932_v0 }
  0xef   :  { %1898 = vmatpush3.bf16.msra.mxu0 %v1897_v36 }
  0xf0   :  { %1899 = vmatprep.subr.bf16.mxu0 %v1932_v0  ;;  %v1709_v0 = vld [vmem:[%s3762_s11] ss:$0 sm:$0xff]  ;;  %s1937_s11 = smov 64  }
  0xf3   :  { %1901 = vmatpush3.bf16.msra.mxu0 %v1900_v61 }
  0xf6   :  { %1823 = vmatmul.mubr.f32.vlgmr.msra.gmra.mrb[2].mxu0 %v1409_v62 }
 0x111   :  { %v1295_v42 = vpop.f32.mrb[0].mxu1 }
 0x112   :  { %v1296_v35 = vadd.f32 %v1706_v34, %v1295_v42  ;;  %v1789_v32 = vpop.f32.mrb[1].mxu1 }
 0x114   :  { %v1299_v5 = vmax.f32 %v1296_v35, 0.0 }
 0x116   :  { %1665 = vrot.lane.b32.xlu0 %v1299_v5, %s1935_s8 }
 0x188   :  { %v1666_v8 = vpop.permute.xlu0 %1665 }
 0x1a6   :  { %v1659_v17 = vpop.f32.mrb[2].mxu1 }
 0x1a7   :  { %v1660_v63 = vadd.f32 %v1709_v0, %v1659_v17  ;;  %v1859_v55 = vpop.f32.mrb[3].mxu1 }
 0x1a9   :  { %v959_v46 = vpop.f32.mrb[0].mxu0  ;;  %v1663_v1 = vmax.f32 %v1660_v63, 0.0 }
 0x1aa   :  { %v1770_v40 = vpop.f32.mrb[1].mxu0  ;;  %v960_v48 = vadd.f32 %v1704_v27, %v959_v46 }
 0x1ab   :  { %1673 = vrot.lane.b32.xlu1 %v1663_v1, %s1936_s4 }
 0x1ac   :  { %v963_v16 = vmax.f32 %v960_v48, 0.0 }
 0x1ae   :  { %v1676_v24 = vsel %vm305_vm2, %v963_v16, %v1666_v8 }
 0x1c9   :  { %v1477_v45 = vpop.f32.mrb[2].mxu0 }
 0x1ca   :  { %v1478_v58 = vadd.f32 %v1708_v49, %v1477_v45  ;;  %v1824_v4 = vpop.f32.mrb[3].mxu0 }
 0x1cc   :  { %v1481_v10 = vmax.f32 %v1478_v58, 0.0 }
 0x1ce   :  { %1669 = vrot.lane.b32.xlu0 %v1481_v10, %s1937_s11 }
 0x21d   :  { %v1674_v21 = vpop.permute.xlu1 %1673 }
 0x240   :  { %v1670_v25 = vpop.permute.xlu0 %1669 }
 0x241   :  { %v1677_v26 = vsel %vm1028_vm1, %v1676_v24, %v1670_v25 }
 0x242   :  { %v1679_v33 = vsel %vm1678_vm10, %v1677_v26, %v1674_v21 }
 0x243   :  { %v1687_v23 = vmul.f32 %v1710_v60, %v1679_v33 }
 0x245   :  { %1688 = vadd.xlane.f32.xlu1 %v1687_v23 }
 0x2d2   :  { %v1689_v19 = vpop.xlane.xlu1 %1688 }
 0x2d3   :  { %v1697_v29 = vadd.f32 %v1711_v7, %v1689_v19 }
 0x2d5   :  { %1699 = vst.msk [vmem:[%s3767_s14] sm:$0xff] %vm1698_vm11, %v1697_v29 }

</bundles_post_ra>
